<compile_context>
chip_gen: v6e
topology: v6e:2x2x1
jax: 0.10.0
libtpu: 0.0.40
codegen_flags: <defaults>
</compile_context>

<pallas_src>
import functools
import math

import jax
import jax.numpy as jnp
from jax.experimental import pallas as pl
from jax.experimental.pallas import tpu as pltpu

_EPS = 1e-5  # torch.nn.LayerNorm default eps


# ----------------------------------------------------------------------------
# Shared math helpers (used inside the kernel and by the pure-JAX reference)
# ----------------------------------------------------------------------------
def _layernorm(x, gamma, beta):
    mu = jnp.mean(x, axis=-1, keepdims=True)
    xc = x - mu
    var = jnp.mean(xc * xc, axis=-1, keepdims=True)
    return xc * jax.lax.rsqrt(var + _EPS) * gamma + beta


def _gelu_tanh(x):
    c = 0.7978845608028654  # sqrt(2/pi)
    return 0.5 * x * (1.0 + jnp.tanh(c * (x + 0.044715 * x * x * x)))


# ----------------------------------------------------------------------------
# Fused kernel: proj_in -> depth x (PerceiverAttention + FeedForward) -> proj_out/norm
# ----------------------------------------------------------------------------
def _make_fused_kernel(heads, dim_head, n1, nq, b_blk):
    inner = heads * dim_head
    nk = n1 + nq
    scale = 1.0 / math.sqrt(dim_head)  # == (dim_head**-0.25) applied to both q and k
    bf16, f32 = jnp.bfloat16, jnp.float32

    def kernel(x_ref, lat0_ref, pin_w_ref, pin_b_ref,
               n1g_ref, n1b_ref, n2g_ref, n2b_ref,
               wq_ref, wkv_ref, wo_ref,
               ffg_ref, ffb_ref, w1_ref, w2_ref,
               pout_w_ref, pout_b_ref, og_ref, ob_ref,
               out_ref,
               x_sc, lat_sc, kvin_sc, hln_sc, ffacc_sc):
        l = pl.program_id(1)
        c = pl.program_id(2)
        last_l = pl.num_programs(1) - 1
        last_c = pl.num_programs(2) - 1
        d = x_sc.shape[-1]              # model dim
        o_dim = out_ref.shape[-1]       # output dim

        # ---- once per batch block: proj_in(x) into VMEM, latent init ----
        @pl.when(jnp.logical_and(l == 0, c == 0))
        def _init():
            xe = x_ref[...].reshape(b_blk * n1, x_ref.shape[-1]).astype(bf16)
            x_sc[...] = (jnp.dot(xe, pin_w_ref[...], preferred_element_type=f32)
                         + pin_b_ref[...])
            lat_sc[...] = jnp.broadcast_to(lat0_ref[...], (b_blk, nq, d)
                                           ).reshape(b_blk * nq, d)

        # ---- once per layer: PerceiverAttention + residual, FF prologue ----
        @pl.when(c == 0)
        def _attention():
            lat = lat_sc[...]                                     # (B*nq, d) f32
            xn = _layernorm(x_sc[...], n1g_ref[0], n1b_ref[0])    # (B*n1, d)
            ltn = _layernorm(lat, n2g_ref[0], n2b_ref[0])         # (B*nq, d)

            # kv_input == concat([norm1(x), norm2(latents)], seq axis), per batch block
            kvin_sc[:, 0:n1, :] = xn.reshape(b_blk, n1, d)
            kvin_sc[:, n1:nk, :] = ltn.reshape(b_blk, nq, d)

            q = jnp.dot(ltn.astype(bf16), wq_ref[0],
                        preferred_element_type=f32) * scale        # (B*nq, inner)
            kv = jnp.dot(kvin_sc[...].reshape(b_blk * nk, d).astype(bf16),
                         wkv_ref[0], preferred_element_type=f32)   # (B*nk, 2*inner)
            q3 = q.reshape(b_blk, nq, inner).astype(bf16)
            kv3 = kv.reshape(b_blk, nk, 2 * inner).astype(bf16)

            # Per-head attention on register-level lane slices; the head merge is folded
            # into to_out by accumulating against the matching wo row-block (no scratch
            # round trips, no masked 64-lane stores).
            attn = jnp.zeros((b_blk * nq, d), f32)
            for h in range(heads):
                lo = h * dim_head
                qh = q3[:, :, lo:lo + dim_head]                     # (B, nq, dh)
                kh = kv3[:, :, lo:lo + dim_head]                    # (B, nk, dh)
                vh = kv3[:, :, inner + lo:inner + lo + dim_head]    # (B, nk, dh)
                s = jnp.einsum("bqd,bkd->bqk", qh, kh,
                               preferred_element_type=f32)          # (B, nq, nk)
                s = s - jnp.max(s, axis=-1, keepdims=True)
                e = jnp.exp(s)
                p = e / jnp.sum(e, axis=-1, keepdims=True)          # exact softmax
                oh = jnp.einsum("bqk,bkd->bqd", p.astype(bf16), vh,
                                preferred_element_type=f32)         # (B, nq, dh)
                attn = attn + jnp.dot(
                    oh.reshape(b_blk * nq, dim_head).astype(bf16),
                    wo_ref[0, lo:lo + dim_head, :],
                    preferred_element_type=f32)
            lat = lat + attn
            lat_sc[...] = lat

            # FF prologue: LayerNorm once, reused by every ff-chunk grid step
            hln_sc[...] = _layernorm(lat, ffg_ref[0], ffb_ref[0]).astype(bf16)
            ffacc_sc[...] = jnp.zeros_like(ffacc_sc)

        # ---- every grid step: one ff_inner chunk of the FeedForward ----
        h1 = jnp.dot(hln_sc[...], w1_ref[0], preferred_element_type=f32)
        ffacc_sc[...] += jnp.dot(_gelu_tanh(h1).astype(bf16), w2_ref[0],
                                 preferred_element_type=f32)

        # ---- last chunk of the layer: FF residual ----
        @pl.when(c == last_c)
        def _ff_residual():
            lat_sc[...] = lat_sc[...] + ffacc_sc[...]

        # ---- last layer & last chunk: proj_out + norm_out ----
        @pl.when(jnp.logical_and(l == last_l, c == last_c))
        def _finalize():
            y = jnp.dot(lat_sc[...].astype(bf16), pout_w_ref[...],
                        preferred_element_type=f32) + pout_b_ref[...]
            y = _layernorm(y, og_ref[...], ob_ref[...])
            out_ref[...] = y.reshape(b_blk, nq, o_dim).astype(out_ref.dtype)

    return kernel


def _vmem_limit_bytes():
    cap = 128 * 1024 * 1024
    try:
        info = pltpu.get_tpu_info()
        cap = int(getattr(info, "vmem_capacity_bytes", cap) or cap)
    except Exception:
        pass
    # ~25% headroom for compiler-internal scratch + BlockSpec double buffers
    # (v7x: 64 MiB physical -> ~48 MiB budget; v5e/v6e: 128 MiB -> ~96 MiB).
    return (cap * 3) // 4


def resampler_forward(x, params, *, heads, dim_head, ff_chunk=None,
                      batch_block=None, layer_buffers=3):
    B, N1, E = x.shape
    lat0 = params["latents"]
    _, NQ, D = lat0.shape
    O = params["proj_out_w"].shape[1]
    depth = params["wq"].shape[0]
    ff_inner = params["w1"].shape[2]

    if batch_block is None:
        batch_block = B          # stream each layer's weights once for the whole batch
    assert B % batch_block == 0
    BB = B // batch_block

    vmem_budget = _vmem_limit_bytes()
    if ff_chunk is None:
        # Collapse the ff-chunk axis when w1/w2 fit comfortably; otherwise halve until the
        # double-buffered bf16 chunk pair fits in ~half the VMEM budget.
        ff_chunk = ff_inner
        while (8 * D * ff_chunk > vmem_budget // 2 and ff_chunk % 2 == 0
               and ff_chunk > 256):
            ff_chunk //= 2
    assert ff_inner % ff_chunk == 0
    KC = ff_inner // ff_chunk

    def const(a):
        nd = a.ndim
        return pl.BlockSpec(a.shape, lambda bb, l, c: (0,) * nd)

    def per_layer(a):
        nd = a.ndim
        shape = (1,) + a.shape[1:]
        idx = lambda bb, l, c: (l,) + (0,) * (nd - 1)
        if layer_buffers is None:
            return pl.BlockSpec(shape, idx)
        # 3-deep pipeline on per-layer weights hides the layer-boundary weight DMA.
        return pl.BlockSpec(shape, idx, pipeline_mode=pl.Buffered(layer_buffers))

    in_specs = [
        pl.BlockSpec((batch_block, N1, E), lambda bb, l, c: (bb, 0, 0)),   # x
        const(lat0),                                                       # init latents
        const(params["proj_in_w"]), const(params["proj_in_b"]),
        per_layer(params["n1_g"]), per_layer(params["n1_b"]),
        per_layer(params["n2_g"]), per_layer(params["n2_b"]),
        per_layer(params["wq"]), per_layer(params["wkv"]), per_layer(params["wo"]),
        per_layer(params["ffn_g"]), per_layer(params["ffn_b"]),
        pl.BlockSpec((1, D, ff_chunk), lambda bb, l, c: (l, 0, c)),        # w1 chunk
        pl.BlockSpec((1, ff_chunk, D), lambda bb, l, c: (l, c, 0)),        # w2 chunk
        const(params["proj_out_w"]), const(params["proj_out_b"]),
        const(params["norm_out_g"]), const(params["norm_out_b"]),
    ]
    out_spec = pl.BlockSpec((batch_block, NQ, O), lambda bb, l, c: (bb, 0, 0))

    kernel = _make_fused_kernel(heads, dim_head, N1, NQ, batch_block)
    return pl.pallas_call(
        kernel,
        out_shape=jax.ShapeDtypeStruct((B, NQ, O), jnp.float32),
        grid=(BB, depth, KC),
        in_specs=in_specs,
        out_specs=out_spec,
        scratch_shapes=[
            pltpu.VMEM((batch_block * N1, D), jnp.float32),      # proj_in(x), resident
            pltpu.VMEM((batch_block * NQ, D), jnp.float32),      # latents accumulator
            pltpu.VMEM((batch_block, N1 + NQ, D), jnp.float32),  # shared KV input
            pltpu.VMEM((batch_block * NQ, D), jnp.bfloat16),     # LN(latents) for FF
            pltpu.VMEM((batch_block * NQ, D), jnp.float32),      # FF chunk accumulator
        ],
        compiler_params=pltpu.CompilerParams(
            dimension_semantics=("parallel", "arbitrary", "arbitrary"),
            vmem_limit_bytes=vmem_budget,
        ),
    )(x, lat0, params["proj_in_w"], params["proj_in_b"],
      params["n1_g"], params["n1_b"], params["n2_g"], params["n2_b"],
      params["wq"], params["wkv"], params["wo"],
      params["ffn_g"], params["ffn_b"], params["w1"], params["w2"],
      params["proj_out_w"], params["proj_out_b"],
      params["norm_out_g"], params["norm_out_b"])


# ----------------------------------------------------------------------------
# Pure-JAX reference (mirrors the kernel's bf16 cast points, f32 accumulation)
# ----------------------------------------------------------------------------
def resampler_reference(x, params, *, heads, dim_head):
    bf, f32 = jnp.bfloat16, jnp.float32

    def dot(a, b):
        return jnp.dot(a.astype(bf), b.astype(bf), preferred_element_type=f32)

    B = x.shape[0]
    inner = heads * dim_head
    depth = params["wq"].shape[0]
    scale = 1.0 / math.sqrt(dim_head)

    def split_heads(t):
        b, n, _ = t.shape
        return t.reshape(b, n, heads, dim_head).transpose(0, 2, 1, 3)

    xp = dot(x, params["proj_in_w"]) + params["proj_in_b"]
    lat = jnp.broadcast_to(params["latents"],
                           (B,) + params["latents"].shape[1:]).astype(f32)
    for i in range(depth):
        xn = _layernorm(xp, params["n1_g"][i], params["n1_b"][i])
        ltn = _layernorm(lat, params["n2_g"][i], params["n2_b"][i])
        q = dot(ltn, params["wq"][i]) * scale
        kv = dot(jnp.concatenate([xn, ltn], axis=1), params["wkv"][i])
        k, v = kv[..., :inner], kv[..., inner:]
        q4, k4, v4 = (split_heads(t.astype(bf)) for t in (q, k, v))
        s = jnp.einsum("bhqd,bhkd->bhqk", q4, k4, preferred_element_type=f32)
        p = jax.nn.softmax(s, axis=-1)
        o4 = jnp.einsum("bhqk,bhkd->bhqd", p.astype(bf), v4, preferred_element_type=f32)
        o = o4.transpose(0, 2, 1, 3).reshape(B, -1, inner)
        lat = lat + dot(o, params["wo"][i])
        h = _layernorm(lat, params["ffn_g"][i], params["ffn_b"][i])
        g = _gelu_tanh(dot(h, params["w1"][i]))
        lat = lat + dot(g, params["w2"][i])
    y = dot(lat, params["proj_out_w"]) + params["proj_out_b"]
    return _layernorm(y, params["norm_out_g"], params["norm_out_b"])


# ----------------------------------------------------------------------------
# Deterministic synthetic parameters (shapes follow Resampler.__init__)
# ----------------------------------------------------------------------------
def init_params(key, *, embedding_dim, dim, output_dim, heads, dim_head,
                num_queries, depth, ff_mult):
    inner = heads * dim_head
    ff_inner = dim * ff_mult
    keys = iter(jax.random.split(key, 5 + 5 * depth))

    def lin(k, fan_in, fan_out):
        s = 1.0 / math.sqrt(fan_in)
        return jax.random.uniform(k, (fan_in, fan_out), jnp.float32, -s, s
                                  ).astype(jnp.bfloat16)

    def stack(fan_in, fan_out):
        return jnp.stack([lin(next(keys), fan_in, fan_out) for _ in range(depth)], axis=0)

    return {
        "latents": (jax.random.normal(next(keys), (1, num_queries, dim), jnp.float32)
                    / math.sqrt(dim)),
        "proj_in_w": lin(next(keys), embedding_dim, dim),
        "proj_in_b": jax.random.uniform(next(keys), (1, dim), jnp.float32, -0.02, 0.02),
        "proj_out_w": lin(next(keys), dim, output_dim),
        "proj_out_b": jax.random.uniform(next(keys), (1, output_dim), jnp.float32,
                                         -0.02, 0.02),
        "norm_out_g": jnp.ones((1, output_dim), jnp.float32),
        "norm_out_b": jnp.zeros((1, output_dim), jnp.float32),
        "n1_g": jnp.ones((depth, 1, dim), jnp.float32),
        "n1_b": jnp.zeros((depth, 1, dim), jnp.float32),
        "n2_g": jnp.ones((depth, 1, dim), jnp.float32),
        "n2_b": jnp.zeros((depth, 1, dim), jnp.float32),
        "ffn_g": jnp.ones((depth, 1, dim), jnp.float32),
        "ffn_b": jnp.zeros((depth, 1, dim), jnp.float32),
        "wq": stack(dim, inner),
        "wkv": stack(dim, 2 * inner),
        "wo": stack(inner, dim),
        "w1": stack(dim, ff_inner),
        "w2": stack(ff_inner, dim),
    }


# ----------------------------------------------------------------------------
if __name__ == "__main__":
    # Small, lane/sublane-dense config consistent with Resampler's structure.
    B, N1, E = 2, 16, 64          # batch, image-feature seq len, embedding_dim
    D, O = 128, 128               # dim, output_dim
    HEADS, DH = 2, 64             # heads, dim_head  (inner = 128)
    NQ, DEPTH, FF_MULT = 8, 2, 2  # num_queries, depth, ff_mult (ff_inner = 256)

    root = jax.random.PRNGKey(0)
    k_param, k_x = jax.random.split(root)
    params = init_params(k_param, embedding_dim=E, dim=D, output_dim=O,
                         heads=HEADS, dim_head=DH, num_queries=NQ,
                         depth=DEPTH, ff_mult=FF_MULT)
    x = jax.random.normal(k_x, (B, N1, E), jnp.float32)

    def _run(layer_buffers):
        fwd = jax.jit(functools.partial(resampler_forward, heads=HEADS, dim_head=DH,
                                        layer_buffers=layer_buffers))
        return jax.block_until_ready(fwd(x, params))

    try:
        out = _run(3)        # 3-deep per-layer weight pipeline (per perf review)
    except Exception:
        out = _run(None)     # fall back to the default 2-deep pipeline

    assert out.shape == (B, NQ, O), out.shape
    assert bool(jnp.all(jnp.isfinite(out)))

    ref = resampler_reference(x, params, heads=HEADS, dim_head=DH)
    err = float(jnp.max(jnp.abs(out - ref)))
    assert err < 5e-2, f"max abs err {err}"
    print("KERNEL_OK")
</pallas_src>

<mosaic_0001>
module attributes {stable_mosaic.version = 11 : i64} {
  func.func @kernel(%arg0: i32, %arg1: i32, %arg2: i32, %arg3: memref<2x16x64xf32, #tpu.memory_space<vmem>>, %arg4: memref<1x8x128xf32, #tpu.memory_space<vmem>>, %arg5: memref<64x128xbf16, #tpu.memory_space<vmem>>, %arg6: memref<1x128xf32, #tpu.memory_space<vmem>>, %arg7: memref<1x1x128xf32, #tpu.memory_space<vmem>>, %arg8: memref<1x1x128xf32, #tpu.memory_space<vmem>>, %arg9: memref<1x1x128xf32, #tpu.memory_space<vmem>>, %arg10: memref<1x1x128xf32, #tpu.memory_space<vmem>>, %arg11: memref<1x128x128xbf16, #tpu.memory_space<vmem>>, %arg12: memref<1x128x256xbf16, #tpu.memory_space<vmem>>, %arg13: memref<1x128x128xbf16, #tpu.memory_space<vmem>>, %arg14: memref<1x1x128xf32, #tpu.memory_space<vmem>>, %arg15: memref<1x1x128xf32, #tpu.memory_space<vmem>>, %arg16: memref<1x128x256xbf16, #tpu.memory_space<vmem>>, %arg17: memref<1x256x128xbf16, #tpu.memory_space<vmem>>, %arg18: memref<128x128xbf16, #tpu.memory_space<vmem>>, %arg19: memref<1x128xf32, #tpu.memory_space<vmem>>, %arg20: memref<1x128xf32, #tpu.memory_space<vmem>>, %arg21: memref<1x128xf32, #tpu.memory_space<vmem>>, %arg22: memref<2x8x128xf32, #tpu.memory_space<vmem>>, %arg23: memref<32x128xf32, #tpu.memory_space<vmem>>, %arg24: memref<16x128xf32, #tpu.memory_space<vmem>>, %arg25: memref<2x24x128xf32, #tpu.memory_space<vmem>>, %arg26: memref<16x128xbf16, #tpu.memory_space<vmem>>, %arg27: memref<16x128xf32, #tpu.memory_space<vmem>>) attributes {dimension_semantics = [#tpu.dimension_semantics<parallel>, #tpu.dimension_semantics<arbitrary>, #tpu.dimension_semantics<arbitrary>], iteration_bounds = array<i64: 1, 2, 1>, scalar_prefetch = 0 : i64, scratch_operands = 5 : i64, tpu.core_type = #tpu.core_type<tc>, window_params = [{transform_indices = @transform_0, window_bounds = array<i64: 2, 16, 64>}, {pipeline_mode = #tpu.pipeline_mode<synchronous>, transform_indices = @transform_1, window_bounds = array<i64: 1, 8, 128>}, {pipeline_mode = #tpu.pipeline_mode<synchronous>, transform_indices = @transform_2, window_bounds = array<i64: 64, 128>}, {pipeline_mode = #tpu.pipeline_mode<synchronous>, transform_indices = @transform_3, window_bounds = array<i64: 1, 128>}, {transform_indices = @transform_4, window_bounds = array<i64: 1, 1, 128>}, {transform_indices = @transform_5, window_bounds = array<i64: 1, 1, 128>}, {transform_indices = @transform_6, window_bounds = array<i64: 1, 1, 128>}, {transform_indices = @transform_7, window_bounds = array<i64: 1, 1, 128>}, {transform_indices = @transform_8, window_bounds = array<i64: 1, 128, 128>}, {transform_indices = @transform_9, window_bounds = array<i64: 1, 128, 256>}, {transform_indices = @transform_10, window_bounds = array<i64: 1, 128, 128>}, {transform_indices = @transform_11, window_bounds = array<i64: 1, 1, 128>}, {transform_indices = @transform_12, window_bounds = array<i64: 1, 1, 128>}, {transform_indices = @transform_13, window_bounds = array<i64: 1, 128, 256>}, {transform_indices = @transform_14, window_bounds = array<i64: 1, 256, 128>}, {pipeline_mode = #tpu.pipeline_mode<synchronous>, transform_indices = @transform_15, window_bounds = array<i64: 128, 128>}, {pipeline_mode = #tpu.pipeline_mode<synchronous>, transform_indices = @transform_16, window_bounds = array<i64: 1, 128>}, {pipeline_mode = #tpu.pipeline_mode<synchronous>, transform_indices = @transform_17, window_bounds = array<i64: 1, 128>}, {pipeline_mode = #tpu.pipeline_mode<synchronous>, transform_indices = @transform_18, window_bounds = array<i64: 1, 128>}, {transform_indices = @transform_19, window_bounds = array<i64: 2, 8, 128>}]} {
    %c0_i32 = arith.constant 0 : i32
    %0 = arith.cmpi eq, %arg1, %c0_i32 : i32
    %c0_i32_0 = arith.constant 0 : i32
    %1 = arith.cmpi eq, %arg2, %c0_i32_0 : i32
    %2 = arith.andi %0, %1 : i1
    %3 = arith.extui %2 : i1 to i32
    %c0_i32_1 = arith.constant 0 : i32
    %4 = arith.cmpi ne, %3, %c0_i32_1 : i32
    scf.if %4 {
      %c0_24 = arith.constant 0 : index
      %c0_25 = arith.constant 0 : index
      %c0_26 = arith.constant 0 : index
      %40 = vector.load %arg3[%c0_24, %c0_25, %c0_26] : memref<2x16x64xf32, #tpu.memory_space<vmem>>, vector<2x16x64xf32>
      %41 = vector.shape_cast %40 : vector<2x16x64xf32> to vector<32x64xf32>
      %42 = arith.truncf %41 : vector<32x64xf32> to vector<32x64xbf16>
      %c0_27 = arith.constant 0 : index
      %c0_28 = arith.constant 0 : index
      %43 = vector.load %arg5[%c0_27, %c0_28] : memref<64x128xbf16, #tpu.memory_space<vmem>>, vector<64x128xbf16>
      %cst_29 = arith.constant dense<0.000000e+00> : vector<32x128xf32>
      %44 = tpu.matmul %42, %43, %cst_29 {dimension_numbers = #tpu.dot_dimension_numbers<[1], [0], [0], [1], [0, 0, 1, 1], [], []>} : vector<32x64xbf16>, vector<64x128xbf16>, vector<32x128xf32> -> vector<32x128xf32>
      %c0_30 = arith.constant 0 : index
      %c0_31 = arith.constant 0 : index
      %45 = vector.load %arg6[%c0_30, %c0_31] : memref<1x128xf32, #tpu.memory_space<vmem>>, vector<1x128xf32>
      %46 = vector.broadcast %45 : vector<1x128xf32> to vector<32x128xf32>
      %47 = arith.addf %44, %46 : vector<32x128xf32>
      %c0_32 = arith.constant 0 : index
      %c0_33 = arith.constant 0 : index
      %48 = vector.load %arg23[%c0_32, %c0_33] : memref<32x128xf32, #tpu.memory_space<vmem>>, vector<32x128xf32>
      tpu.vector_store %arg23[%c0_32, %c0_33], %47 {strides = array<i32>} : memref<32x128xf32, #tpu.memory_space<vmem>>, vector<32x128xf32>,
      %c0_34 = arith.constant 0 : index
      %c0_35 = arith.constant 0 : index
      %c0_36 = arith.constant 0 : index
      %49 = vector.load %arg4[%c0_34, %c0_35, %c0_36] : memref<1x8x128xf32, #tpu.memory_space<vmem>>, vector<1x8x128xf32>
      %50 = vector.shape_cast %49 : vector<1x8x128xf32> to vector<1x8x128xf32>
      %51 = vector.broadcast %50 : vector<1x8x128xf32> to vector<2x8x128xf32>
      %52 = vector.shape_cast %51 : vector<2x8x128xf32> to vector<16x128xf32>
      %c0_37 = arith.constant 0 : index
      %c0_38 = arith.constant 0 : index
      %53 = vector.load %arg24[%c0_37, %c0_38] : memref<16x128xf32, #tpu.memory_space<vmem>>, vector<16x128xf32>
      tpu.vector_store %arg24[%c0_37, %c0_38], %52 {strides = array<i32>} : memref<16x128xf32, #tpu.memory_space<vmem>>, vector<16x128xf32>,
    } else {
    }
    %c0_i32_2 = arith.constant 0 : i32
    %5 = arith.cmpi eq, %arg2, %c0_i32_2 : i32
    %6 = arith.extui %5 : i1 to i32
    %c0_i32_3 = arith.constant 0 : i32
    %7 = arith.cmpi ne, %6, %c0_i32_3 : i32
    scf.if %7 {
      %c0_24 = arith.constant 0 : index
      %c0_25 = arith.constant 0 : index
      %40 = vector.load %arg24[%c0_24, %c0_25] : memref<16x128xf32, #tpu.memory_space<vmem>>, vector<16x128xf32>
      %c0_26 = arith.constant 0 : index
      %c0_27 = arith.constant 0 : index
      %41 = vector.load %arg23[%c0_26, %c0_27] : memref<32x128xf32, #tpu.memory_space<vmem>>, vector<32x128xf32>
      %c0_28 = arith.constant 0 : index
      %c0_29 = arith.constant 0 : index
      %c0_30 = arith.constant 0 : index
      %42 = vector.load %arg7[%c0_28, %c0_29, %c0_30] : memref<1x1x128xf32, #tpu.memory_space<vmem>>, vector<1x1x128xf32>
      %43 = vector.shape_cast %42 : vector<1x1x128xf32> to vector<1x128xf32>
      %c0_31 = arith.constant 0 : index
      %c0_32 = arith.constant 0 : index
      %c0_33 = arith.constant 0 : index
      %44 = vector.load %arg8[%c0_31, %c0_32, %c0_33] : memref<1x1x128xf32, #tpu.memory_space<vmem>>, vector<1x1x128xf32>
      %45 = vector.shape_cast %44 : vector<1x1x128xf32> to vector<1x128xf32>
      %cst_34 = arith.constant dense<0.000000e+00> : vector<32xf32>
      %46 = vector.multi_reduction <add>, %41, %cst_34 [1] : vector<32x128xf32> to vector<32xf32>
      %47 = vector.shape_cast %46 : vector<32xf32> to vector<32x1xf32>
      %cst_35 = arith.constant 1.280000e+02 : f32
      %48 = vector.broadcast %cst_35 : f32 to vector<32x1xf32>
      %49 = arith.divf %47, %48 : vector<32x1xf32>
      %50 = vector.broadcast %49 : vector<32x1xf32> to vector<32x128xf32>
      %51 = arith.subf %41, %50 : vector<32x128xf32>
      %52 = arith.mulf %51, %51 : vector<32x128xf32>
      %cst_36 = arith.constant dense<0.000000e+00> : vector<32xf32>
      %53 = vector.multi_reduction <add>, %52, %cst_36 [1] : vector<32x128xf32> to vector<32xf32>
      %54 = vector.shape_cast %53 : vector<32xf32> to vector<32x1xf32>
      %cst_37 = arith.constant 1.280000e+02 : f32
      %55 = vector.broadcast %cst_37 : f32 to vector<32x1xf32>
      %56 = arith.divf %54, %55 : vector<32x1xf32>
      %cst_38 = arith.constant 9.99999974E-6 : f32
      %57 = vector.broadcast %cst_38 : f32 to vector<32x1xf32>
      %58 = arith.addf %56, %57 : vector<32x1xf32>
      %59 = math.rsqrt %58 : vector<32x1xf32>
      %60 = vector.broadcast %59 : vector<32x1xf32> to vector<32x128xf32>
      %61 = arith.mulf %51, %60 : vector<32x128xf32>
      %62 = vector.broadcast %43 : vector<1x128xf32> to vector<32x128xf32>
      %63 = arith.mulf %61, %62 : vector<32x128xf32>
      %64 = vector.broadcast %45 : vector<1x128xf32> to vector<32x128xf32>
      %65 = arith.addf %63, %64 : vector<32x128xf32>
      %c0_39 = arith.constant 0 : index
      %c0_40 = arith.constant 0 : index
      %c0_41 = arith.constant 0 : index
      %66 = vector.load %arg9[%c0_39, %c0_40, %c0_41] : memref<1x1x128xf32, #tpu.memory_space<vmem>>, vector<1x1x128xf32>
      %67 = vector.shape_cast %66 : vector<1x1x128xf32> to vector<1x128xf32>
      %c0_42 = arith.constant 0 : index
      %c0_43 = arith.constant 0 : index
      %c0_44 = arith.constant 0 : index
      %68 = vector.load %arg10[%c0_42, %c0_43, %c0_44] : memref<1x1x128xf32, #tpu.memory_space<vmem>>, vector<1x1x128xf32>
      %69 = vector.shape_cast %68 : vector<1x1x128xf32> to vector<1x128xf32>
      %cst_45 = arith.constant dense<0.000000e+00> : vector<16xf32>
      %70 = vector.multi_reduction <add>, %40, %cst_45 [1] : vector<16x128xf32> to vector<16xf32>
      %71 = vector.shape_cast %70 : vector<16xf32> to vector<16x1xf32>
      %cst_46 = arith.constant 1.280000e+02 : f32
      %72 = vector.broadcast %cst_46 : f32 to vector<16x1xf32>
      %73 = arith.divf %71, %72 : vector<16x1xf32>
      %74 = vector.broadcast %73 : vector<16x1xf32> to vector<16x128xf32>
      %75 = arith.subf %40, %74 : vector<16x128xf32>
      %76 = arith.mulf %75, %75 : vector<16x128xf32>
      %cst_47 = arith.constant dense<0.000000e+00> : vector<16xf32>
      %77 = vector.multi_reduction <add>, %76, %cst_47 [1] : vector<16x128xf32> to vector<16xf32>
      %78 = vector.shape_cast %77 : vector<16xf32> to vector<16x1xf32>
      %cst_48 = arith.constant 1.280000e+02 : f32
      %79 = vector.broadcast %cst_48 : f32 to vector<16x1xf32>
      %80 = arith.divf %78, %79 : vector<16x1xf32>
      %cst_49 = arith.constant 9.99999974E-6 : f32
      %81 = vector.broadcast %cst_49 : f32 to vector<16x1xf32>
      %82 = arith.addf %80, %81 : vector<16x1xf32>
      %83 = math.rsqrt %82 : vector<16x1xf32>
      %84 = vector.broadcast %83 : vector<16x1xf32> to vector<16x128xf32>
      %85 = arith.mulf %75, %84 : vector<16x128xf32>
      %86 = vector.broadcast %67 : vector<1x128xf32> to vector<16x128xf32>
      %87 = arith.mulf %85, %86 : vector<16x128xf32>
      %88 = vector.broadcast %69 : vector<1x128xf32> to vector<16x128xf32>
      %89 = arith.addf %87, %88 : vector<16x128xf32>
      %90 = vector.shape_cast %65 : vector<32x128xf32> to vector<2x16x128xf32>
      %c0_50 = arith.constant 0 : index
      %c0_51 = arith.constant 0 : index
      %c0_52 = arith.constant 0 : index
      %91 = vector.load %arg25[%c0_50, %c0_51, %c0_52] : memref<2x24x128xf32, #tpu.memory_space<vmem>>, vector<2x16x128xf32>
      tpu.vector_store %arg25[%c0_50, %c0_51, %c0_52], %90 {strides = array<i32>} : memref<2x24x128xf32, #tpu.memory_space<vmem>>, vector<2x16x128xf32>,
      %92 = vector.shape_cast %89 : vector<16x128xf32> to vector<2x8x128xf32>
      %c0_53 = arith.constant 0 : index
      %c16 = arith.constant 16 : index
      %c0_54 = arith.constant 0 : index
      %93 = vector.load %arg25[%c0_53, %c16, %c0_54] : memref<2x24x128xf32, #tpu.memory_space<vmem>>, vector<2x8x128xf32>
      tpu.vector_store %arg25[%c0_53, %c16, %c0_54], %92 {strides = array<i32>} : memref<2x24x128xf32, #tpu.memory_space<vmem>>, vector<2x8x128xf32>,
      %94 = arith.truncf %89 : vector<16x128xf32> to vector<16x128xbf16>
      %c0_55 = arith.constant 0 : index
      %c0_56 = arith.constant 0 : index
      %c0_57 = arith.constant 0 : index
      %95 = vector.load %arg11[%c0_55, %c0_56, %c0_57] : memref<1x128x128xbf16, #tpu.memory_space<vmem>>, vector<1x128x128xbf16>
      %96 = vector.shape_cast %95 : vector<1x128x128xbf16> to vector<128x128xbf16>
      %cst_58 = arith.constant dense<0.000000e+00> : vector<16x128xf32>
      %97 = tpu.matmul %94, %96, %cst_58 {dimension_numbers = #tpu.dot_dimension_numbers<[1], [0], [0], [1], [0, 0, 1, 1], [], []>} : vector<16x128xbf16>, vector<128x128xbf16>, vector<16x128xf32> -> vector<16x128xf32>
      %cst_59 = arith.constant 1.250000e-01 : f32
      %98 = vector.broadcast %cst_59 : f32 to vector<16x128xf32>
      %99 = arith.mulf %97, %98 : vector<16x128xf32>
      %c0_60 = arith.constant 0 : index
      %c0_61 = arith.constant 0 : index
      %c0_62 = arith.constant 0 : index
      %100 = vector.load %arg25[%c0_60, %c0_61, %c0_62] : memref<2x24x128xf32, #tpu.memory_space<vmem>>, vector<2x24x128xf32>
      %101 = vector.shape_cast %100 : vector<2x24x128xf32> to vector<48x128xf32>
      %102 = arith.truncf %101 : vector<48x128xf32> to vector<48x128xbf16>
      %c0_63 = arith.constant 0 : index
      %c0_64 = arith.constant 0 : index
      %c0_65 = arith.constant 0 : index
      %103 = vector.load %arg12[%c0_63, %c0_64, %c0_65] : memref<1x128x256xbf16, #tpu.memory_space<vmem>>, vector<1x128x256xbf16>
      %104 = vector.shape_cast %103 : vector<1x128x256xbf16> to vector<128x256xbf16>
      %cst_66 = arith.constant dense<0.000000e+00> : vector<48x256xf32>
      %105 = tpu.matmul %102, %104, %cst_66 {dimension_numbers = #tpu.dot_dimension_numbers<[1], [0], [0], [1], [0, 0, 1, 1], [], []>} : vector<48x128xbf16>, vector<128x256xbf16>, vector<48x256xf32> -> vector<48x256xf32>
      %106 = vector.shape_cast %99 : vector<16x128xf32> to vector<2x8x128xf32>
      %107 = arith.truncf %106 : vector<2x8x128xf32> to vector<2x8x128xbf16>
      %108 = vector.shape_cast %105 : vector<48x256xf32> to vector<2x24x256xf32>
      %109 = arith.truncf %108 : vector<2x24x256xf32> to vector<2x24x256xbf16>
      %cst_67 = arith.constant 0.000000e+00 : f32
      %110 = vector.broadcast %cst_67 : f32 to vector<16x128xf32>
      %111 = vector.extract_strided_slice %107 {offsets = [0, 0, 0], sizes = [2, 8, 64], strides = [1, 1, 1]} : vector<2x8x128xbf16> to vector<2x8x64xbf16>
      %112 = vector.extract_strided_slice %109 {offsets = [0, 0, 0], sizes = [2, 24, 64], strides = [1, 1, 1]} : vector<2x24x256xbf16> to vector<2x24x64xbf16>
      %113 = vector.extract_strided_slice %109 {offsets = [0, 0, 128], sizes = [2, 24, 64], strides = [1, 1, 1]} : vector<2x24x256xbf16> to vector<2x24x64xbf16>
      "tpu.trace_start"() <{level = 10 : i32, message = "bqd,bkd->bqk"}> : () -> ()
      %cst_68 = arith.constant dense<0.000000e+00> : vector<2x8x24xf32>
      %114 = tpu.matmul %111, %112, %cst_68 {dimension_numbers = #tpu.dot_dimension_numbers<[2], [2], [1], [1], [0, 0, 0, 1, 1, 1], [0], [0]>} : vector<2x8x64xbf16>, vector<2x24x64xbf16>, vector<2x8x24xf32> -> vector<2x8x24xf32>
      "tpu.trace_stop"() : () -> ()
      %cst_69 = arith.constant dense<0xFF800000> : vector<2x8xf32>
      %115 = vector.multi_reduction <maximumf>, %114, %cst_69 [2] : vector<2x8x24xf32> to vector<2x8xf32>
      %116 = vector.shape_cast %115 : vector<2x8xf32> to vector<2x8x1xf32>
      %117 = vector.broadcast %116 : vector<2x8x1xf32> to vector<2x8x24xf32>
      %118 = arith.subf %114, %117 : vector<2x8x24xf32>
      %119 = math.exp %118 : vector<2x8x24xf32>
      %cst_70 = arith.constant dense<0.000000e+00> : vector<2x8xf32>
      %120 = vector.multi_reduction <add>, %119, %cst_70 [2] : vector<2x8x24xf32> to vector<2x8xf32>
      %121 = vector.shape_cast %120 : vector<2x8xf32> to vector<2x8x1xf32>
      %122 = vector.broadcast %121 : vector<2x8x1xf32> to vector<2x8x24xf32>
      %123 = arith.divf %119, %122 : vector<2x8x24xf32>
      %124 = arith.truncf %123 : vector<2x8x24xf32> to vector<2x8x24xbf16>
      "tpu.trace_start"() <{level = 10 : i32, message = "bqk,bkd->bqd"}> : () -> ()
      %cst_71 = arith.constant dense<0.000000e+00> : vector<2x8x64xf32>
      %125 = tpu.matmul %124, %113, %cst_71 {dimension_numbers = #tpu.dot_dimension_numbers<[2], [1], [1], [2], [0, 0, 0, 1, 1, 2], [0], [0]>} : vector<2x8x24xbf16>, vector<2x24x64xbf16>, vector<2x8x64xf32> -> vector<2x8x64xf32>
      "tpu.trace_stop"() : () -> ()
      %126 = vector.shape_cast %125 : vector<2x8x64xf32> to vector<16x64xf32>
      %127 = arith.truncf %126 : vector<16x64xf32> to vector<16x64xbf16>
      %c0_72 = arith.constant 0 : index
      %c0_73 = arith.constant 0 : index
      %c0_74 = arith.constant 0 : index
      %128 = vector.load %arg13[%c0_72, %c0_73, %c0_74] : memref<1x128x128xbf16, #tpu.memory_space<vmem>>, vector<1x64x128xbf16>
      %129 = vector.shape_cast %128 : vector<1x64x128xbf16> to vector<64x128xbf16>
      %cst_75 = arith.constant dense<0.000000e+00> : vector<16x128xf32>
      %130 = tpu.matmul %127, %129, %cst_75 {dimension_numbers = #tpu.dot_dimension_numbers<[1], [0], [0], [1], [0, 0, 1, 1], [], []>} : vector<16x64xbf16>, vector<64x128xbf16>, vector<16x128xf32> -> vector<16x128xf32>
      %131 = arith.addf %110, %130 : vector<16x128xf32>
      %132 = vector.extract_strided_slice %107 {offsets = [0, 0, 64], sizes = [2, 8, 64], strides = [1, 1, 1]} : vector<2x8x128xbf16> to vector<2x8x64xbf16>
      %133 = vector.extract_strided_slice %109 {offsets = [0, 0, 64], sizes = [2, 24, 64], strides = [1, 1, 1]} : vector<2x24x256xbf16> to vector<2x24x64xbf16>
      %134 = vector.extract_strided_slice %109 {offsets = [0, 0, 192], sizes = [2, 24, 64], strides = [1, 1, 1]} : vector<2x24x256xbf16> to vector<2x24x64xbf16>
      "tpu.trace_start"() <{level = 10 : i32, message = "bqd,bkd->bqk"}> : () -> ()
      %cst_76 = arith.constant dense<0.000000e+00> : vector<2x8x24xf32>
      %135 = tpu.matmul %132, %133, %cst_76 {dimension_numbers = #tpu.dot_dimension_numbers<[2], [2], [1], [1], [0, 0, 0, 1, 1, 1], [0], [0]>} : vector<2x8x64xbf16>, vector<2x24x64xbf16>, vector<2x8x24xf32> -> vector<2x8x24xf32>
      "tpu.trace_stop"() : () -> ()
      %cst_77 = arith.constant dense<0xFF800000> : vector<2x8xf32>
      %136 = vector.multi_reduction <maximumf>, %135, %cst_77 [2] : vector<2x8x24xf32> to vector<2x8xf32>
      %137 = vector.shape_cast %136 : vector<2x8xf32> to vector<2x8x1xf32>
      %138 = vector.broadcast %137 : vector<2x8x1xf32> to vector<2x8x24xf32>
      %139 = arith.subf %135, %138 : vector<2x8x24xf32>
      %140 = math.exp %139 : vector<2x8x24xf32>
      %cst_78 = arith.constant dense<0.000000e+00> : vector<2x8xf32>
      %141 = vector.multi_reduction <add>, %140, %cst_78 [2] : vector<2x8x24xf32> to vector<2x8xf32>
      %142 = vector.shape_cast %141 : vector<2x8xf32> to vector<2x8x1xf32>
      %143 = vector.broadcast %142 : vector<2x8x1xf32> to vector<2x8x24xf32>
      %144 = arith.divf %140, %143 : vector<2x8x24xf32>
      %145 = arith.truncf %144 : vector<2x8x24xf32> to vector<2x8x24xbf16>
      "tpu.trace_start"() <{level = 10 : i32, message = "bqk,bkd->bqd"}> : () -> ()
      %cst_79 = arith.constant dense<0.000000e+00> : vector<2x8x64xf32>
      %146 = tpu.matmul %145, %134, %cst_79 {dimension_numbers = #tpu.dot_dimension_numbers<[2], [1], [1], [2], [0, 0, 0, 1, 1, 2], [0], [0]>} : vector<2x8x24xbf16>, vector<2x24x64xbf16>, vector<2x8x64xf32> -> vector<2x8x64xf32>
      "tpu.trace_stop"() : () -> ()
      %147 = vector.shape_cast %146 : vector<2x8x64xf32> to vector<16x64xf32>
      %148 = arith.truncf %147 : vector<16x64xf32> to vector<16x64xbf16>
      %c0_80 = arith.constant 0 : index
      %c64 = arith.constant 64 : index
      %c0_81 = arith.constant 0 : index
      %149 = vector.load %arg13[%c0_80, %c64, %c0_81] : memref<1x128x128xbf16, #tpu.memory_space<vmem>>, vector<1x64x128xbf16>
      %150 = vector.shape_cast %149 : vector<1x64x128xbf16> to vector<64x128xbf16>
      %cst_82 = arith.constant dense<0.000000e+00> : vector<16x128xf32>
      %151 = tpu.matmul %148, %150, %cst_82 {dimension_numbers = #tpu.dot_dimension_numbers<[1], [0], [0], [1], [0, 0, 1, 1], [], []>} : vector<16x64xbf16>, vector<64x128xbf16>, vector<16x128xf32> -> vector<16x128xf32>
      %152 = arith.addf %131, %151 : vector<16x128xf32>
      %153 = arith.addf %40, %152 : vector<16x128xf32>
      %c0_83 = arith.constant 0 : index
      %c0_84 = arith.constant 0 : index
      %154 = vector.load %arg24[%c0_83, %c0_84] : memref<16x128xf32, #tpu.memory_space<vmem>>, vector<16x128xf32>
      tpu.vector_store %arg24[%c0_83, %c0_84], %153 {strides = array<i32>} : memref<16x128xf32, #tpu.memory_space<vmem>>, vector<16x128xf32>,
      %c0_85 = arith.constant 0 : index
      %c0_86 = arith.constant 0 : index
      %c0_87 = arith.constant 0 : index
      %155 = vector.load %arg14[%c0_85, %c0_86, %c0_87] : memref<1x1x128xf32, #tpu.memory_space<vmem>>, vector<1x1x128xf32>
      %156 = vector.shape_cast %155 : vector<1x1x128xf32> to vector<1x128xf32>
      %c0_88 = arith.constant 0 : index
      %c0_89 = arith.constant 0 : index
      %c0_90 = arith.constant 0 : index
      %157 = vector.load %arg15[%c0_88, %c0_89, %c0_90] : memref<1x1x128xf32, #tpu.memory_space<vmem>>, vector<1x1x128xf32>
      %158 = vector.shape_cast %157 : vector<1x1x128xf32> to vector<1x128xf32>
      %cst_91 = arith.constant dense<0.000000e+00> : vector<16xf32>
      %159 = vector.multi_reduction <add>, %153, %cst_91 [1] : vector<16x128xf32> to vector<16xf32>
      %160 = vector.shape_cast %159 : vector<16xf32> to vector<16x1xf32>
      %cst_92 = arith.constant 1.280000e+02 : f32
      %161 = vector.broadcast %cst_92 : f32 to vector<16x1xf32>
      %162 = arith.divf %160, %161 : vector<16x1xf32>
      %163 = vector.broadcast %162 : vector<16x1xf32> to vector<16x128xf32>
      %164 = arith.subf %153, %163 : vector<16x128xf32>
      %165 = arith.mulf %164, %164 : vector<16x128xf32>
      %cst_93 = arith.constant dense<0.000000e+00> : vector<16xf32>
      %166 = vector.multi_reduction <add>, %165, %cst_93 [1] : vector<16x128xf32> to vector<16xf32>
      %167 = vector.shape_cast %166 : vector<16xf32> to vector<16x1xf32>
      %cst_94 = arith.constant 1.280000e+02 : f32
      %168 = vector.broadcast %cst_94 : f32 to vector<16x1xf32>
      %169 = arith.divf %167, %168 : vector<16x1xf32>
      %cst_95 = arith.constant 9.99999974E-6 : f32
      %170 = vector.broadcast %cst_95 : f32 to vector<16x1xf32>
      %171 = arith.addf %169, %170 : vector<16x1xf32>
      %172 = math.rsqrt %171 : vector<16x1xf32>
      %173 = vector.broadcast %172 : vector<16x1xf32> to vector<16x128xf32>
      %174 = arith.mulf %164, %173 : vector<16x128xf32>
      %175 = vector.broadcast %156 : vector<1x128xf32> to vector<16x128xf32>
      %176 = arith.mulf %174, %175 : vector<16x128xf32>
      %177 = vector.broadcast %158 : vector<1x128xf32> to vector<16x128xf32>
      %178 = arith.addf %176, %177 : vector<16x128xf32>
      %179 = arith.truncf %178 : vector<16x128xf32> to vector<16x128xbf16>
      %c0_96 = arith.constant 0 : index
      %c0_97 = arith.constant 0 : index
      %180 = vector.load %arg26[%c0_96, %c0_97] : memref<16x128xbf16, #tpu.memory_space<vmem>>, vector<16x128xbf16>
      tpu.vector_store %arg26[%c0_96, %c0_97], %179 {strides = array<i32>} : memref<16x128xbf16, #tpu.memory_space<vmem>>, vector<16x128xbf16>,
      %cst_98 = arith.constant 0.000000e+00 : f32
      %181 = vector.broadcast %cst_98 : f32 to vector<16x128xf32>
      %c0_99 = arith.constant 0 : index
      %c0_100 = arith.constant 0 : index
      %182 = vector.load %arg27[%c0_99, %c0_100] : memref<16x128xf32, #tpu.memory_space<vmem>>, vector<16x128xf32>
      tpu.vector_store %arg27[%c0_99, %c0_100], %181 {strides = array<i32>} : memref<16x128xf32, #tpu.memory_space<vmem>>, vector<16x128xf32>,
    } else {
    }
    %c0 = arith.constant 0 : index
    %c0_4 = arith.constant 0 : index
    %8 = vector.load %arg26[%c0, %c0_4] : memref<16x128xbf16, #tpu.memory_space<vmem>>, vector<16x128xbf16>
    %c0_5 = arith.constant 0 : index
    %c0_6 = arith.constant 0 : index
    %c0_7 = arith.constant 0 : index
    %9 = vector.load %arg16[%c0_5, %c0_6, %c0_7] : memref<1x128x256xbf16, #tpu.memory_space<vmem>>, vector<1x128x256xbf16>
    %10 = vector.shape_cast %9 : vector<1x128x256xbf16> to vector<128x256xbf16>
    %cst = arith.constant dense<0.000000e+00> : vector<16x256xf32>
    %11 = tpu.matmul %8, %10, %cst {dimension_numbers = #tpu.dot_dimension_numbers<[1], [0], [0], [1], [0, 0, 1, 1], [], []>} : vector<16x128xbf16>, vector<128x256xbf16>, vector<16x256xf32> -> vector<16x256xf32>
    %c0_8 = arith.constant 0 : index
    %c0_9 = arith.constant 0 : index
    %12 = vector.load %arg27[%c0_8, %c0_9] : memref<16x128xf32, #tpu.memory_space<vmem>>, vector<16x128xf32>
    %cst_10 = arith.constant 5.000000e-01 : f32
    %13 = vector.broadcast %cst_10 : f32 to vector<16x256xf32>
    %14 = arith.mulf %13, %11 : vector<16x256xf32>
    %cst_11 = arith.constant 4.471500e-02 : f32
    %15 = vector.broadcast %cst_11 : f32 to vector<16x256xf32>
    %16 = arith.mulf %15, %11 : vector<16x256xf32>
    %17 = arith.mulf %16, %11 : vector<16x256xf32>
    %18 = arith.mulf %17, %11 : vector<16x256xf32>
    %19 = arith.addf %11, %18 : vector<16x256xf32>
    %cst_12 = arith.constant 0.797884583 : f32
    %20 = vector.broadcast %cst_12 : f32 to vector<16x256xf32>
    %21 = arith.mulf %20, %19 : vector<16x256xf32>
    %22 = math.tanh %21 : vector<16x256xf32>
    %cst_13 = arith.constant 1.000000e+00 : f32
    %23 = vector.broadcast %cst_13 : f32 to vector<16x256xf32>
    %24 = arith.addf %23, %22 : vector<16x256xf32>
    %25 = arith.mulf %14, %24 : vector<16x256xf32>
    %26 = arith.truncf %25 : vector<16x256xf32> to vector<16x256xbf16>
    %c0_14 = arith.constant 0 : index
    %c0_15 = arith.constant 0 : index
    %c0_16 = arith.constant 0 : index
    %27 = vector.load %arg17[%c0_14, %c0_15, %c0_16] : memref<1x256x128xbf16, #tpu.memory_space<vmem>>, vector<1x256x128xbf16>
    %28 = vector.shape_cast %27 : vector<1x256x128xbf16> to vector<256x128xbf16>
    %cst_17 = arith.constant dense<0.000000e+00> : vector<16x128xf32>
    %29 = tpu.matmul %26, %28, %cst_17 {dimension_numbers = #tpu.dot_dimension_numbers<[1], [0], [0], [1], [0, 0, 1, 1], [], []>} : vector<16x256xbf16>, vector<256x128xbf16>, vector<16x128xf32> -> vector<16x128xf32>
    %30 = arith.addf %12, %29 : vector<16x128xf32>
    %c0_18 = arith.constant 0 : index
    %c0_19 = arith.constant 0 : index
    %31 = vector.load %arg27[%c0_18, %c0_19] : memref<16x128xf32, #tpu.memory_space<vmem>>, vector<16x128xf32>
    tpu.vector_store %arg27[%c0_18, %c0_19], %30 {strides = array<i32>} : memref<16x128xf32, #tpu.memory_space<vmem>>, vector<16x128xf32>,
    %c0_i32_20 = arith.constant 0 : i32
    %32 = arith.cmpi eq, %arg2, %c0_i32_20 : i32
    %33 = arith.extui %32 : i1 to i32
    %c0_i32_21 = arith.constant 0 : i32
    %34 = arith.cmpi ne, %33, %c0_i32_21 : i32
    scf.if %34 {
      %c0_24 = arith.constant 0 : index
      %c0_25 = arith.constant 0 : index
      %40 = vector.load %arg24[%c0_24, %c0_25] : memref<16x128xf32, #tpu.memory_space<vmem>>, vector<16x128xf32>
      %c0_26 = arith.constant 0 : index
      %c0_27 = arith.constant 0 : index
      %41 = vector.load %arg27[%c0_26, %c0_27] : memref<16x128xf32, #tpu.memory_space<vmem>>, vector<16x128xf32>
      %42 = arith.addf %40, %41 : vector<16x128xf32>
      %c0_28 = arith.constant 0 : index
      %c0_29 = arith.constant 0 : index
      %43 = vector.load %arg24[%c0_28, %c0_29] : memref<16x128xf32, #tpu.memory_space<vmem>>, vector<16x128xf32>
      tpu.vector_store %arg24[%c0_28, %c0_29], %42 {strides = array<i32>} : memref<16x128xf32, #tpu.memory_space<vmem>>, vector<16x128xf32>,
    } else {
    }
    %c1_i32 = arith.constant 1 : i32
    %35 = arith.cmpi eq, %arg1, %c1_i32 : i32
    %c0_i32_22 = arith.constant 0 : i32
    %36 = arith.cmpi eq, %arg2, %c0_i32_22 : i32
    %37 = arith.andi %35, %36 : i1
    %38 = arith.extui %37 : i1 to i32
    %c0_i32_23 = arith.constant 0 : i32
    %39 = arith.cmpi ne, %38, %c0_i32_23 : i32
    scf.if %39 {
      %c0_24 = arith.constant 0 : index
      %c0_25 = arith.constant 0 : index
      %40 = vector.load %arg24[%c0_24, %c0_25] : memref<16x128xf32, #tpu.memory_space<vmem>>, vector<16x128xf32>
      %41 = arith.truncf %40 : vector<16x128xf32> to vector<16x128xbf16>
      %c0_26 = arith.constant 0 : index
      %c0_27 = arith.constant 0 : index
      %42 = vector.load %arg18[%c0_26, %c0_27] : memref<128x128xbf16, #tpu.memory_space<vmem>>, vector<128x128xbf16>
      %cst_28 = arith.constant dense<0.000000e+00> : vector<16x128xf32>
      %43 = tpu.matmul %41, %42, %cst_28 {dimension_numbers = #tpu.dot_dimension_numbers<[1], [0], [0], [1], [0, 0, 1, 1], [], []>} : vector<16x128xbf16>, vector<128x128xbf16>, vector<16x128xf32> -> vector<16x128xf32>
      %c0_29 = arith.constant 0 : index
      %c0_30 = arith.constant 0 : index
      %44 = vector.load %arg19[%c0_29, %c0_30] : memref<1x128xf32, #tpu.memory_space<vmem>>, vector<1x128xf32>
      %45 = vector.broadcast %44 : vector<1x128xf32> to vector<16x128xf32>
      %46 = arith.addf %43, %45 : vector<16x128xf32>
      %c0_31 = arith.constant 0 : index
      %c0_32 = arith.constant 0 : index
      %47 = vector.load %arg20[%c0_31, %c0_32] : memref<1x128xf32, #tpu.memory_space<vmem>>, vector<1x128xf32>
      %c0_33 = arith.constant 0 : index
      %c0_34 = arith.constant 0 : index
      %48 = vector.load %arg21[%c0_33, %c0_34] : memref<1x128xf32, #tpu.memory_space<vmem>>, vector<1x128xf32>
      %cst_35 = arith.constant dense<0.000000e+00> : vector<16xf32>
      %49 = vector.multi_reduction <add>, %46, %cst_35 [1] : vector<16x128xf32> to vector<16xf32>
      %50 = vector.shape_cast %49 : vector<16xf32> to vector<16x1xf32>
      %cst_36 = arith.constant 1.280000e+02 : f32
      %51 = vector.broadcast %cst_36 : f32 to vector<16x1xf32>
      %52 = arith.divf %50, %51 : vector<16x1xf32>
      %53 = vector.broadcast %52 : vector<16x1xf32> to vector<16x128xf32>
      %54 = arith.subf %46, %53 : vector<16x128xf32>
      %55 = arith.mulf %54, %54 : vector<16x128xf32>
      %cst_37 = arith.constant dense<0.000000e+00> : vector<16xf32>
      %56 = vector.multi_reduction <add>, %55, %cst_37 [1] : vector<16x128xf32> to vector<16xf32>
      %57 = vector.shape_cast %56 : vector<16xf32> to vector<16x1xf32>
      %cst_38 = arith.constant 1.280000e+02 : f32
      %58 = vector.broadcast %cst_38 : f32 to vector<16x1xf32>
      %59 = arith.divf %57, %58 : vector<16x1xf32>
      %cst_39 = arith.constant 9.99999974E-6 : f32
      %60 = vector.broadcast %cst_39 : f32 to vector<16x1xf32>
      %61 = arith.addf %59, %60 : vector<16x1xf32>
      %62 = math.rsqrt %61 : vector<16x1xf32>
      %63 = vector.broadcast %62 : vector<16x1xf32> to vector<16x128xf32>
      %64 = arith.mulf %54, %63 : vector<16x128xf32>
      %65 = vector.broadcast %47 : vector<1x128xf32> to vector<16x128xf32>
      %66 = arith.mulf %64, %65 : vector<16x128xf32>
      %67 = vector.broadcast %48 : vector<1x128xf32> to vector<16x128xf32>
      %68 = arith.addf %66, %67 : vector<16x128xf32>
      %69 = vector.shape_cast %68 : vector<16x128xf32> to vector<2x8x128xf32>
      %c0_40 = arith.constant 0 : index
      %c0_41 = arith.constant 0 : index
      %c0_42 = arith.constant 0 : index
      %70 = vector.load %arg22[%c0_40, %c0_41, %c0_42] : memref<2x8x128xf32, #tpu.memory_space<vmem>>, vector<2x8x128xf32>
      tpu.vector_store %arg22[%c0_40, %c0_41, %c0_42], %69 {strides = array<i32>} : memref<2x8x128xf32, #tpu.memory_space<vmem>>, vector<2x8x128xf32>,
    } else {
    }
    return
  }
  func.func @transform_0(%arg0: i32, %arg1: i32, %arg2: i32) -> (i32, i32, i32) {
    %c0_i32 = arith.constant 0 : i32
    %c0_i32_0 = arith.constant 0 : i32
    %c0_i32_1 = arith.constant 0 : i32
    return %arg0, %c0_i32, %c0_i32_0 : i32, i32, i32
  }
  func.func @transform_1(%arg0: i32, %arg1: i32, %arg2: i32) -> (i32, i32, i32) {
    %c0_i32 = arith.constant 0 : i32
    %c0_i32_0 = arith.constant 0 : i32
    %c0_i32_1 = arith.constant 0 : i32
    %c0_i32_2 = arith.constant 0 : i32
    return %c0_i32, %c0_i32_0, %c0_i32_1 : i32, i32, i32
  }
  func.func @transform_2(%arg0: i32, %arg1: i32, %arg2: i32) -> (i32, i32) {
    %c0_i32 = arith.constant 0 : i32
    %c0_i32_0 = arith.constant 0 : i32
    %c0_i32_1 = arith.constant 0 : i32
    return %c0_i32, %c0_i32_0 : i32, i32
  }
  func.func @transform_3(%arg0: i32, %arg1: i32, %arg2: i32) -> (i32, i32) {
    %c0_i32 = arith.constant 0 : i32
    %c0_i32_0 = arith.constant 0 : i32
    %c0_i32_1 = arith.constant 0 : i32
    return %c0_i32, %c0_i32_0 : i32, i32
  }
  func.func @transform_4(%arg0: i32, %arg1: i32, %arg2: i32) -> (i32, i32, i32) {
    %c0_i32 = arith.constant 0 : i32
    %c0_i32_0 = arith.constant 0 : i32
    %c0_i32_1 = arith.constant 0 : i32
    return %arg1, %c0_i32, %c0_i32_0 : i32, i32, i32
  }
  func.func @transform_5(%arg0: i32, %arg1: i32, %arg2: i32) -> (i32, i32, i32) {
    %c0_i32 = arith.constant 0 : i32
    %c0_i32_0 = arith.constant 0 : i32
    %c0_i32_1 = arith.constant 0 : i32
    return %arg1, %c0_i32, %c0_i32_0 : i32, i32, i32
  }
  func.func @transform_6(%arg0: i32, %arg1: i32, %arg2: i32) -> (i32, i32, i32) {
    %c0_i32 = arith.constant 0 : i32
    %c0_i32_0 = arith.constant 0 : i32
    %c0_i32_1 = arith.constant 0 : i32
    return %arg1, %c0_i32, %c0_i32_0 : i32, i32, i32
  }
  func.func @transform_7(%arg0: i32, %arg1: i32, %arg2: i32) -> (i32, i32, i32) {
    %c0_i32 = arith.constant 0 : i32
    %c0_i32_0 = arith.constant 0 : i32
    %c0_i32_1 = arith.constant 0 : i32
    return %arg1, %c0_i32, %c0_i32_0 : i32, i32, i32
  }
  func.func @transform_8(%arg0: i32, %arg1: i32, %arg2: i32) -> (i32, i32, i32) {
    %c0_i32 = arith.constant 0 : i32
    %c0_i32_0 = arith.constant 0 : i32
    %c0_i32_1 = arith.constant 0 : i32
    return %arg1, %c0_i32, %c0_i32_0 : i32, i32, i32
  }
  func.func @transform_9(%arg0: i32, %arg1: i32, %arg2: i32) -> (i32, i32, i32) {
    %c0_i32 = arith.constant 0 : i32
    %c0_i32_0 = arith.constant 0 : i32
    %c0_i32_1 = arith.constant 0 : i32
    return %arg1, %c0_i32, %c0_i32_0 : i32, i32, i32
  }
  func.func @transform_10(%arg0: i32, %arg1: i32, %arg2: i32) -> (i32, i32, i32) {
    %c0_i32 = arith.constant 0 : i32
    %c0_i32_0 = arith.constant 0 : i32
    %c0_i32_1 = arith.constant 0 : i32
    return %arg1, %c0_i32, %c0_i32_0 : i32, i32, i32
  }
  func.func @transform_11(%arg0: i32, %arg1: i32, %arg2: i32) -> (i32, i32, i32) {
    %c0_i32 = arith.constant 0 : i32
    %c0_i32_0 = arith.constant 0 : i32
    %c0_i32_1 = arith.constant 0 : i32
    return %arg1, %c0_i32, %c0_i32_0 : i32, i32, i32
  }
  func.func @transform_12(%arg0: i32, %arg1: i32, %arg2: i32) -> (i32, i32, i32) {
    %c0_i32 = arith.constant 0 : i32
    %c0_i32_0 = arith.constant 0 : i32
    %c0_i32_1 = arith.constant 0 : i32
    return %arg1, %c0_i32, %c0_i32_0 : i32, i32, i32
  }
  func.func @transform_13(%arg0: i32, %arg1: i32, %arg2: i32) -> (i32, i32, i32) {
    %c0_i32 = arith.constant 0 : i32
    %c0_i32_0 = arith.constant 0 : i32
    return %arg1, %c0_i32, %arg2 : i32, i32, i32
  }
  func.func @transform_14(%arg0: i32, %arg1: i32, %arg2: i32) -> (i32, i32, i32) {
    %c0_i32 = arith.constant 0 : i32
    %c0_i32_0 = arith.constant 0 : i32
    return %arg1, %arg2, %c0_i32 : i32, i32, i32
  }
  func.func @transform_15(%arg0: i32, %arg1: i32, %arg2: i32) -> (i32, i32) {
    %c0_i32 = arith.constant 0 : i32
    %c0_i32_0 = arith.constant 0 : i32
    %c0_i32_1 = arith.constant 0 : i32
    return %c0_i32, %c0_i32_0 : i32, i32
  }
  func.func @transform_16(%arg0: i32, %arg1: i32, %arg2: i32) -> (i32, i32) {
    %c0_i32 = arith.constant 0 : i32
    %c0_i32_0 = arith.constant 0 : i32
    %c0_i32_1 = arith.constant 0 : i32
    return %c0_i32, %c0_i32_0 : i32, i32
  }
  func.func @transform_17(%arg0: i32, %arg1: i32, %arg2: i32) -> (i32, i32) {
    %c0_i32 = arith.constant 0 : i32
    %c0_i32_0 = arith.constant 0 : i32
    %c0_i32_1 = arith.constant 0 : i32
    return %c0_i32, %c0_i32_0 : i32, i32
  }
  func.func @transform_18(%arg0: i32, %arg1: i32, %arg2: i32) -> (i32, i32) {
    %c0_i32 = arith.constant 0 : i32
    %c0_i32_0 = arith.constant 0 : i32
    %c0_i32_1 = arith.constant 0 : i32
    return %c0_i32, %c0_i32_0 : i32, i32
  }
  func.func @transform_19(%arg0: i32, %arg1: i32, %arg2: i32) -> (i32, i32, i32) {
    %c0_i32 = arith.constant 0 : i32
    %c0_i32_0 = arith.constant 0 : i32
    %c0_i32_1 = arith.constant 0 : i32
    return %arg0, %c0_i32, %c0_i32_0 : i32, i32, i32
  }
}

</mosaic_0001>

<bundles_post_ra>
// kernel: resampler_forward.1
= control target key start
LH: loop header
LB: loop body
LE: loop exit
PB: predicated region body
PF: predicated region fallthrough
CT: control target
= control target key end

     0   :  { %s4792_s0 = inlined_call_operand.hbm [shape: f32[2,16,64], index: 0, kind: input, shape index: {}]   ;;  %s4793_s1 = inlined_call_operand.hbm [shape: f32[1,8,128], index: 1, kind: input, shape index: {}]   ;;  %s4794_s2 = inlined_call_operand.hbm [shape: bf16[64,128], index: 2, kind: input, shape index: {}]   ;;  %s4795_s3 = inlined_call_operand.vmem [shape: f32[1,128], index: 3, kind: input, shape index: {}]   ;;  %s4796_s4 = inlined_call_operand.vmem [shape: f32[2,1,128], index: 4, kind: input, shape index: {}]   ;;  %s4797_s5 = inlined_call_operand.vmem [shape: f32[2,1,128], index: 5, kind: input, shape index: {}]   ;;  %s4798_s6 = inlined_call_operand.vmem [shape: f32[2,1,128], index: 6, kind: input, shape index: {}]   ;;  %s4799_s7 = inlined_call_operand.vmem [shape: f32[2,1,128], index: 7, kind: input, shape index: {}]   ;;  %s4800_s8 = inlined_call_operand.hbm [shape: bf16[2,128,128], index: 8, kind: input, shape index: {}]   ;;  %s4801_s9 = inlined_call_operand.hbm [shape: bf16[2,128,256], index: 9, kind: input, shape index: {}]   ;;  %s4802_s10 = inlined_call_operand.hbm [shape: bf16[2,128,128], index: 10, kind: input, shape index: {}]   ;;  %s4803_s11 = inlined_call_operand.hbm [shape: f32[2,1,128], index: 11, kind: input, shape index: {}]   ;;  %s4804_s12 = inlined_call_operand.hbm [shape: f32[2,1,128], index: 12, kind: input, shape index: {}]   ;;  %s4805_s13 = inlined_call_operand.hbm [shape: bf16[2,128,256], index: 13, kind: input, shape index: {}]   ;;  %s4806_s14 = inlined_call_operand.hbm [shape: bf16[2,256,128], index: 14, kind: input, shape index: {}]   ;;  %s4807_s15 = inlined_call_operand.hbm [shape: bf16[128,128], index: 15, kind: input, shape index: {}]   ;;  %s4808_s16 = inlined_call_operand.vmem [shape: f32[1,128], index: 16, kind: input, shape index: {}]   ;;  %s4809_s17 = inlined_call_operand.vmem [shape: f32[1,128], index: 17, kind: input, shape index: {}]   ;;  %s4810_s18 = inlined_call_operand.vmem [shape: f32[1,128], index: 18, kind: input, shape index: {}]   ;;  %s4811_s19 = inlined_call_operand.hbm [shape: f32[2,8,128], index: 19, kind: output, shape index: {}]  }
   0x1   :  { %4831 = sst [smem:[#allocation42_spill]] %s4792_s0 }
   0x2   :  { %4832 = sst [smem:[#allocation43_spill]] %s4793_s1 }
   0x3   :  { %4833 = sst [smem:[#allocation44_spill]] %s4794_s2 }
   0x4   :  { %4834 = sst [smem:[#allocation45_spill]] %s4795_s3 }
   0x5   :  { %4835 = sst [smem:[#allocation46_spill]] %s4796_s4 }
   0x6   :  { %4836 = sst [smem:[#allocation47_spill]] %s4797_s5 }
   0x7   :  { %4837 = sst [smem:[#allocation48_spill]] %s4798_s6 }
   0x8   :  { %4838 = sst [smem:[#allocation49_spill]] %s4799_s7 }
   0x9   :  { %4839 = sst [smem:[#allocation50_spill]] %s4800_s8 }
   0xa   :  { %4840 = sst [smem:[#allocation51_spill]] %s4801_s9 }
   0xb   :  { %4841 = sst [smem:[#allocation52_spill]] %s4802_s10 }
   0xc   :  { %4842 = sst [smem:[#allocation53_spill]] %s4807_s15 }
   0xd   :  { %4843 = sst [smem:[#allocation54_spill]] %s4808_s16 }
   0xe   :  { %4844 = sst [smem:[#allocation55_spill]] %s4809_s17 }
   0xf   :  { %4845 = sst [smem:[#allocation56_spill]] %s4810_s18 }
  0x10   :  { %4846 = sst [smem:[#allocation57_spill]] %s4811_s19 }
  0x11   :  { %24 = vsyncpa [#allocation8], 0 }
  0x12   :  { %25 = vsyncpa [#allocation11], 0 }
  0x13   :  { %26 = vsyncpa [#allocation14], 0 }
  0x14   :  { %28 = vsyncpa [#allocation14 + $0x1], 0 }
  0x15   :  { %29 = vsyncpa [#allocation17], 0 }
  0x16   :  { %31 = vsyncpa [#allocation17 + $0x1], 0 }
  0x17   :  { %32 = vsyncpa [#allocation20], 0 }
  0x18   :  { %34 = vsyncpa [#allocation20 + $0x1], 0 }
  0x19   :  { %35 = vsyncpa [#allocation23], 0 }
  0x1a   :  { %37 = vsyncpa [#allocation23 + $0x1], 0 }
  0x1b   :  { %38 = vsyncpa [#allocation9], 0  ;;  %s4183_s0 = smov 0   ;;  %s4185_s30 = smov 0  }
  0x1c   :  { %s4187_s20 = smov 0   ;;  %s4189_s21 = smov 0  }
  0x1d   :  { %s4191_s1 = smov 0   ;;  %s4193_s22 = smov 0  }
  0x1e LB: > { %4847 = sst [smem:[#allocation34_spill]] %s4041_s30  ;;  %s4212_s2 = sadd.s32 4294967295, %s4057_s22   ;;  %s4057_s22 = sphi %s4193_s22, %s44_s22   ;;  %s4053_s1 = sphi %s4191_s1, %s4906_s1   ;;  %s4049_s21 = sphi %s4189_s21, %s4905_s21   ;;  %s4045_s20 = sphi %s4187_s20, %s4903_s20   ;;  %s4041_s30 = sphi %s4185_s30, %s4902_s30   ;;  %s4037_s0 = sphi %s4183_s0, %s4901_s0  }
  0x1f   : > { %4848 = sst [smem:[#allocation35_spill]] %s4045_s20  ;;  %p276_p0 = scmp.ne.s32.totalorder %s4041_s30, %s4037_s0 }
  0x20   : > { %4849 = sst [smem:[#allocation36_spill]] %s4049_s21  ;;  %p4812_p1 = scmp.eq.s32.totalorder %s4212_s2, 0 }
  0x21   : > { %4850 = sst [smem:[#allocation37_spill]] %s4057_s22  ;;  %p2999_p2 = scmp.ge.s32.totalorder %s4057_s22, 1 }
  0x22   : > { %4851 = sst [smem:[#allocation38_spill]] %s4212_s2  ;;  %p557_p3 = scmp.lt.s32.totalorder %s4057_s22, 3 }
  0x23   : > { %p4220_p4 = por %p4812_p1, %p276_p0  ;;  %s4059_s25 = smov [#allocation10]  }
  0x24   : > { %p4224_p5 = pnand %p2999_p2, %p557_p3  ;;  %s587_s3 = sshll.u32 %s4059_s25, 4  ;;  %s588_s3 = int_to_ptr.vmem [resolvable:$true] %s587_s3 }
  0x25   : > { %s4852_s23 = scalar_select %p4220_p4, 1, 0 }
  0x26   : > { %s4854_s24 = scalar_select %p4224_p5, 1, 0 }
  0x27   : > { %4853 = sst [smem:[#allocation39_spill]] %s4852_s23  ;;  %p3407_p6 = pneg %p4224_p5 }
  0x28   : > { %s4060_s27 = smov [#allocation24]   ;;  %s3666_s29 = scalar_lea.vmem %s588_s3, 128 }
  0x29   : > { %p4232_p7 = pnand %p3407_p6, %p4812_p1  ;;  %s613_s28 = sshll.u32 %s4060_s27, 4  ;;  %s614_s28 = int_to_ptr.vmem [resolvable:$true] %s613_s28 }
  0x2a   : > { %p3667_p9 = scmp.ne.s32.totalorder %s588_s3, %s3666_s29  ;;  %p3674_p12 = scmp.lt.s32.totalorder %s588_s3, %s588_s3 }
  0x2b   : > { %p3657_p8 = pneg %p4232_p7  ;;  %p3675_p13 = scmp.lt.s32.totalorder %s3666_s29, %s3666_s29 }
  0x2d   : > { %p3669_p10 = pnand %p3667_p9, %p3657_p8  ;;  %p3676_p0 = por %p3675_p13, %p3674_p12 }
  0x2f   : > { %p3670_p11 = pneg %p3669_p10 }
  0x31   : > { %p3677_p2 = pnand %p3676_p0, %p3670_p11 }
  0x33   : > { %3680 = shalt.err (!%p3677_p2)
}
  0x34   : > { %s4856_s19 = sld [smem:[#allocation43_spill]]  ;;  %s3692_s27 = scalar_lea.vmem %s614_s28, 1024 }
  0x35   : > { %p3693_p3 = scmp.ne.s32.totalorder %s614_s28, %s3692_s27  ;;  %p3700_p9 = scmp.lt.s32.totalorder %s614_s28, %s614_s28 }
  0x36   : > { %p3701_p10 = scmp.lt.s32.totalorder %s3692_s27, %s3692_s27 }
  0x37   : > { %p3695_p6 = pnand %p3693_p3, %p3657_p8 }
  0x38   : > { %p3702_p4 = por %p3701_p10, %p3700_p9 }
  0x39   : > { %p3696_p1 = pneg %p3695_p6 }
  0x3a   : > { %3413 = dma.hbm_to_vmem [thread:$0]  (!%p4232_p7), %s4856_s19, 128, %s588_s3, [#allocation11]  }
  0x3b   : > { %p3703_p5 = pnand %p3702_p4, %p3696_p1 }
  0x3d   : > { %3706 = shalt.err (!%p3703_p5)
}
  0x3e   : > { %s4815_s29 = smov 64   ;;  %s4817_s19 = smov 4  }
  0x3f   : > { %s4857_s15 = sld [smem:[#allocation53_spill]]  ;;  %s59_s25 = sadd.s32 1, %s4053_s1 }
  0x40   : > { %s263_s27 = sadd.s32 1, %s4045_s20  ;;  %p61_p1 = scmp.ge.s32.totalorder %s59_s25, 2 }
  0x41   : > { %p270_p4 = scmp.ne.s32.totalorder %s4045_s20, %s4041_s30  ;;  %p271_p5 = scmp.eq.s32.totalorder %s4057_s22, 0 }
  0x42   : > { %p3446_p11 = scmp.lt.s32.totalorder %s4057_s22, 2  ;;  %s4908_s25 = smov (%p61_p1, %s59_s25), 0 }
  0x43   : > { %4858 = sst [smem:[#allocation40_spill]] %s4908_s25  ;;  %p272_p12 = por %p271_p5, %p270_p4 }
  0x44   : > { %s4266_s18 = sand.u32 1, %s4057_s22   ;;  %s260_s17 = ssub.s32 %s4053_s1, %s4908_s25 }
  0x45   : > { %3419 = dma.hbm_to_vmem [thread:$0]  (!%p4232_p7), %s4857_s15, 1024, %s614_s28, [#allocation23], %s4815_s29, %s4815_s29, %s4817_s19  }
  0x46   : > { %p261_p13 = scmp.eq.s32.totalorder %s260_s17, 0  ;;  %s4271_s16 = sand.u32 1, %s4045_s20  }
  0x47   : > { %s3005_s28 = sshll.u32 %s4271_s16, 6  ;;  %s3139_s3 = sshll.u32 %s4053_s1, 10 }
  0x48   : > { %s4276_s0 = scalar_select %p261_p13, %s4045_s20, %s263_s27  }
  0x49   : > { %s4860_s8 = sld [smem:[#allocation50_spill]]  ;;  %s664_s7 = scalar_lea.vmem [#allocation13], %s3005_s28 }
  0x4a   : > { %4859 = sst [smem:[#allocation41_spill]] %s4276_s0  ;;  %s671_s6 = sshll.u32 %s664_s7, 4  ;;  %s672_s6 = int_to_ptr.vmem [resolvable:$true] %s671_s6 }
  0x4b   : > { %p4283_p0 = pnand %p3446_p11, %p272_p12  ;;  %s3720_s27 = scalar_lea.vmem %s672_s6, 1024 }
  0x4c   : > { %p3721_p3 = scmp.ne.s32.totalorder %s672_s6, %s3720_s27  ;;  %s4063_s7 = smov [#allocation13]  }
  0x4d   : > { %p4290_p2 = pneg %p4283_p0  ;;  %s3725_s29 = sshll.u32 %s4063_s7, 4  ;;  %s3726_s29 = int_to_ptr.vmem [resolvable:$false] %s3725_s29 }
  0x4e   : > { %s3727_s19 = scalar_lea.vmem %s3726_s29, 2048  ;;  %p3728_p10 = scmp.lt.s32.totalorder %s672_s6, %s3726_s29 }
  0x4f   : > { %s670_s15 = scalar_lea.hbm %s4860_s8, %s3139_s3  ;;  %p3723_p6 = pnand %p3721_p3, %p4290_p2 }
  0x50   : > { %p3729_p1 = scmp.lt.s32.totalorder %s3727_s19, %s3720_s27 }
  0x51   : > { %p3724_p9 = pneg %p3723_p6 }
  0x52   : > { %p3730_p4 = por %p3729_p1, %p3728_p10 }
  0x54   : > { %p3731_p5 = pnand %p3730_p4, %p3724_p9 }
  0x56   : > { %3734 = shalt.err (!%p3731_p5)
}
  0x57   : > { %s4863_s17 = smov 4   ;;  %s4864_s8 = smov 64  }
  0x58   : > { %s4865_s0 = scalar_lea.sflag [#allocation14], %s4266_s18  ;;  %s4866_s10 = sld [smem:[#allocation52_spill]] }
  0x59   : > { %3423 = dma.hbm_to_vmem [thread:$0]  (!%p4283_p0), %s670_s15, 1024, %s672_s6, %s4865_s0, %s4864_s8, %s4864_s8, %s4863_s17  }
  0x5a   : > { %s706_s29 = scalar_lea.vmem [#allocation16], %s3005_s28  ;;  %s3014_s19 = sshll.u32 %s4053_s1, 4 }
  0x5b   : > { %s713_s27 = sshll.u32 %s706_s29, 4  ;;  %s4830_s4 = scalar_lea.sflag [#allocation17], %s4266_s18  ;;  %s714_s27 = int_to_ptr.vmem [resolvable:$true] %s713_s27 }
  0x5c   : > { %s3748_s21 = scalar_lea.vmem %s714_s27, 1024  ;;  %s4064_s23 = smov [#allocation16]  }
  0x5d   : > { %p3749_p11 = scmp.ne.s32.totalorder %s714_s27, %s3748_s21  ;;  %s3753_s30 = sshll.u32 %s4064_s23, 4  ;;  %s3754_s30 = int_to_ptr.vmem [resolvable:$false] %s3753_s30 }
  0x5e   : > { %s712_s22 = scalar_lea.hbm %s4866_s10, %s3139_s3  ;;  %s3755_s2 = scalar_lea.vmem %s3754_s30, 2048 }
  0x5f   : > { %p3751_p12 = pnand %p3749_p11, %p4290_p2  ;;  %p3756_p3 = scmp.lt.s32.totalorder %s714_s27, %s3754_s30 }
  0x60   : > { %p3757_p6 = scmp.lt.s32.totalorder %s3755_s2, %s3748_s21 }
  0x61   : > { %p3752_p13 = pneg %p3751_p12 }
  0x62   : > { %p3758_p9 = por %p3757_p6, %p3756_p3 }
  0x64   : > { %p3759_p10 = pnand %p3758_p9, %p3752_p13 }
  0x66   : > { %3762 = shalt.err (!%p3759_p10)
}
  0x67   : > { %3429 = dma.hbm_to_vmem [thread:$0]  (!%p4283_p0), %s712_s22, 1024, %s714_s27, %s4830_s4, %s4864_s8, %s4864_s8, %s4863_s17  }
  0x68   : > { %s4320_s20 = scalar_lea.hbm %s4803_s11, %s3014_s19  ;;  %s748_s2 = scalar_lea.hbm %s4804_s12, %s3014_s19 }
  0x69   : > { %s743_s23 = scalar_lea.vmem [#allocation19], %s4271_s16  ;;  %s4829_s3 = scalar_lea.sflag [#allocation20], %s4266_s18 }
  0x6a   : > { %s750_s28 = sshll.u32 %s743_s23, 4  ;;  %s4065_s7 = smov [#allocation19]   ;;  %s751_s28 = int_to_ptr.vmem [resolvable:$true] %s750_s28 }
  0x6b   : > { %s3776_s0 = scalar_lea.vmem %s751_s28, 16  ;;  %s3781_s22 = sshll.u32 %s4065_s7, 4  ;;  %s3782_s22 = int_to_ptr.vmem [resolvable:$false] %s3781_s22 }
  0x6c   : > { %p3777_p1 = scmp.ne.s32.totalorder %s751_s28, %s3776_s0  ;;  %s3783_s29 = scalar_lea.vmem %s3782_s22, 32 }
  0x6d   : > { %p3784_p11 = scmp.lt.s32.totalorder %s751_s28, %s3782_s22  ;;  %p3785_p12 = scmp.lt.s32.totalorder %s3783_s29, %s3776_s0 }
  0x6e   : > { %p3779_p4 = pnand %p3777_p1, %p4290_p2 }
  0x6f   : > { %p3786_p13 = por %p3785_p12, %p3784_p11 }
  0x70   : > { %p3780_p5 = pneg %p3779_p4 }
  0x72   : > { %p3787_p3 = pnand %p3786_p13, %p3780_p5 }
  0x74   : > { %3790 = shalt.err (!%p3787_p3)
}
  0x75   : > { %3435 = dma.hbm_to_vmem [thread:$0]  (!%p4283_p0), %s748_s2, 16, %s751_s28, %s4829_s3  }
  0x76   : > { %s4066_s27 = smov [#allocation7]  }
  0x77   : > { %s573_s19 = sshll.u32 %s4066_s27, 4  ;;  %s574_s19 = int_to_ptr.vmem [resolvable:$true] %s573_s19 }
  0x78   : > { %s3802_s6 = scalar_lea.vmem %s574_s19, 512  ;;  %p3810_p1 = scmp.lt.s32.totalorder %s574_s19, %s574_s19 }
  0x79   : > { %p3803_p6 = scmp.ne.s32.totalorder %s574_s19, %s3802_s6  ;;  %p3811_p4 = scmp.lt.s32.totalorder %s3802_s6, %s3802_s6 }
  0x7b   : > { %p3805_p9 = pnand %p3803_p6, %p3657_p8  ;;  %p3812_p11 = por %p3811_p4, %p3810_p1 }
  0x7d   : > { %p3806_p10 = pneg %p3805_p9 }
  0x7f   : > { %p3813_p5 = pnand %p3812_p11, %p3806_p10 }
  0x81   : > { %3816 = shalt.err (!%p3813_p5)
}
  0x82   : > { %s4067_s15 = smov 128   ;;  %s4068_s30 = smov 8  }
  0x83   : > { %s4867_s23 = sld [smem:[#allocation42_spill]]  ;;  %s4069_s28 = smov [#allocation12]  }
  0x84   : > { %s597_s0 = sshll.u32 %s4069_s28, 4  ;;  %s4345_s7 = sshll.u32 %s4271_s16, 7  ;;  %s598_s0 = int_to_ptr.vmem [resolvable:$true] %s597_s0 }
  0x85   : > { %s3828_s22 = scalar_lea.vmem %s598_s0, 512  ;;  %p3836_p6 = scmp.lt.s32.totalorder %s598_s0, %s598_s0 }
  0x86   : > { %p3829_p12 = scmp.ne.s32.totalorder %s598_s0, %s3828_s22  ;;  %p3837_p9 = scmp.lt.s32.totalorder %s3828_s22, %s3828_s22 }
  0x88   : > { %p3831_p13 = pnand %p3829_p12, %p3657_p8  ;;  %p3838_p10 = por %p3837_p9, %p3836_p6 }
  0x89   : > { %3410 = dma.hbm_to_vmem [thread:$0]  (!%p4232_p7), %s4867_s23, 512, %s574_s19, [#allocation8], %s4067_s15, %s4067_s15, %s4068_s30  }
  0x8a   : > { %p3832_p3 = pneg %p3831_p13 }
  0x8c   : > { %p3839_p1 = pnand %p3838_p10, %p3832_p3 }
  0x8e   : > { %3842 = shalt.err (!%p3839_p1)
}
  0x8f   : > { %s4868_s19 = sld [smem:[#allocation44_spill]]  ;;  %s4359_s6 = sshll.u32 %s4053_s1, 11 }
  0x90   : > { %s685_s21 = scalar_lea.vmem [#allocation15], %s4345_s7  ;;  %s4869_s9 = sld [smem:[#allocation51_spill]] }
  0x91   : > { %s692_s2 = sshll.u32 %s685_s21, 4  ;;  %s4070_s29 = smov [#allocation15]   ;;  %s693_s2 = int_to_ptr.vmem [resolvable:$true] %s692_s2 }
  0x92   : > { %s3856_s26 = scalar_lea.vmem %s693_s2, 2048  ;;  %s3861_s27 = sshll.u32 %s4070_s29, 4  ;;  %s3862_s27 = int_to_ptr.vmem [resolvable:$false] %s3861_s27 }
  0x93   : > { %p3857_p8 = scmp.ne.s32.totalorder %s693_s2, %s3856_s26  ;;  %s3863_s3 = scalar_lea.vmem %s3862_s27, 4096 }
  0x94   : > { %p3865_p5 = scmp.lt.s32.totalorder %s3863_s3, %s3856_s26 }
  0x95   : > { %3416 = dma.hbm_to_vmem [thread:$0]  (!%p4232_p7), %s4868_s19, 512, %s598_s0, [#allocation11], %s4864_s8, %s4864_s8, %s4863_s17  }
  0x96   : > { %s691_s22 = scalar_lea.hbm %s4869_s9, %s4359_s6  ;;  %p3859_p4 = pnand %p3857_p8, %p4290_p2 }
  0x97   : > { %p3864_p7 = scmp.lt.s32.totalorder %s693_s2, %s3862_s27 }
  0x98   : > { %p3860_p11 = pneg %p3859_p4 }
  0x99   : > { %p3866_p12 = por %p3865_p5, %p3864_p7 }
  0x9b   : > { %p3867_p13 = pnand %p3866_p12, %p3860_p11 }
  0x9d   : > { %3870 = shalt.err (!%p3867_p13)
}
  0x9e   : > { %s4870_s0 = scalar_lea.sflag [#allocation14], %s4266_s18  ;;  %s726_s19 = scalar_lea.vmem [#allocation18], %s4271_s16 }
  0x9f   : > { %3426 = dma.hbm_to_vmem [thread:$0]  (!%p4283_p0), %s691_s22, 2048, %s693_s2, %s4870_s0, %s4067_s15, %s4067_s15, %s4068_s30  }
  0xa0   : > { %s733_s21 = sshll.u32 %s726_s19, 4  ;;  %s769_s3 = scalar_lea.hbm %s4805_s13, %s4359_s6  ;;  %s734_s21 = int_to_ptr.vmem [resolvable:$true] %s733_s21 }
  0xa1   : > { %s761_s26 = scalar_lea.vmem [#allocation21], %s4345_s7  ;;  %s3884_s27 = scalar_lea.vmem %s734_s21, 16 }
  0xa2   : > { %s770_s29 = sshll.u32 %s761_s26, 4  ;;  %p3885_p3 = scmp.ne.s32.totalorder %s734_s21, %s3884_s27  ;;  %s771_s29 = int_to_ptr.vmem [resolvable:$true] %s770_s29 }
  0xa3   : > { %s4071_s4 = smov [#allocation18]  }
  0xa4   : > { %p3887_p6 = pnand %p3885_p3, %p4290_p2  ;;  %s3889_s9 = sshll.u32 %s4071_s4, 4  ;;  %s3890_s9 = int_to_ptr.vmem [resolvable:$false] %s3889_s9 }
  0xa5   : > { %s3891_s10 = scalar_lea.vmem %s3890_s9, 32  ;;  %p3892_p10 = scmp.lt.s32.totalorder %s734_s21, %s3890_s9 }
  0xa6   : > { %p3888_p9 = pneg %p3887_p6  ;;  %p3893_p1 = scmp.lt.s32.totalorder %s3891_s10, %s3884_s27 }
  0xa8   : > { %p3894_p8 = por %p3893_p1, %p3892_p10 }
  0xaa   : > { %p3895_p4 = pnand %p3894_p8, %p3888_p9 }
  0xac   : > { %3898 = shalt.err (!%p3895_p4)
}
  0xad   : > { %s4871_s16 = scalar_lea.sflag [#allocation17], %s4266_s18  ;;  %s3912_s2 = scalar_lea.vmem %s771_s29, 2048 }
  0xae   : > { %3432 = dma.hbm_to_vmem [thread:$0]  (!%p4283_p0), %s4320_s20, 16, %s734_s21, %s4871_s16  }
  0xaf   : > { %p3913_p11 = scmp.ne.s32.totalorder %s771_s29, %s3912_s2  ;;  %s4072_s4 = smov [#allocation21]  }
  0xb0   : > { %s3917_s22 = sshll.u32 %s4072_s4, 4  ;;  %s3918_s22 = int_to_ptr.vmem [resolvable:$false] %s3917_s22 }
  0xb1   : > { %p3915_p7 = pnand %p3913_p11, %p4290_p2  ;;  %s3919_s9 = scalar_lea.vmem %s3918_s22, 4096 }
  0xb2   : > { %p3920_p12 = scmp.lt.s32.totalorder %s771_s29, %s3918_s22  ;;  %p3921_p13 = scmp.lt.s32.totalorder %s3919_s9, %s3912_s2 }
  0xb3   : > { %p3916_p5 = pneg %p3915_p7 }
  0xb4   : > { %p3922_p3 = por %p3921_p13, %p3920_p12 }
  0xb6   : > { %p3923_p6 = pnand %p3922_p3, %p3916_p5 }
  0xb8   : > { %3926 = shalt.err (!%p3923_p6)
}
  0xb9   : > { %s4872_s10 = scalar_lea.sflag [#allocation20], %s4266_s18  ;;  %s792_s23 = scalar_lea.hbm %s4806_s14, %s4359_s6 }
  0xba   : > { %3438 = dma.hbm_to_vmem [thread:$0]  (!%p4283_p0), %s769_s3, 2048, %s771_s29, %s4872_s10, %s4067_s15, %s4067_s15, %s4068_s30  }
  0xbb   : > { %s784_s28 = scalar_lea.vmem [#allocation22], %s4345_s7  ;;  %s781_s27 = scalar_lea.sflag [#allocation23], %s4266_s18 }
  0xbc   : > { %s793_s26 = sshll.u32 %s784_s28, 4  ;;  %s4073_s2 = smov [#allocation22]   ;;  %s794_s26 = int_to_ptr.vmem [resolvable:$true] %s793_s26 }
  0xbd   : > { %s3940_s16 = scalar_lea.vmem %s794_s26, 2048  ;;  %s3945_s4 = sshll.u32 %s4073_s2, 4  ;;  %s3946_s4 = int_to_ptr.vmem [resolvable:$false] %s3945_s4 }
  0xbe   : > { %p3941_p9 = scmp.ne.s32.totalorder %s794_s26, %s3940_s16  ;;  %s3947_s22 = scalar_lea.vmem %s3946_s4, 4096 }
  0xbf   : > { %p3948_p8 = scmp.lt.s32.totalorder %s794_s26, %s3946_s4  ;;  %p3949_p4 = scmp.lt.s32.totalorder %s3947_s22, %s3940_s16 }
  0xc0   : > { %p3943_p10 = pnand %p3941_p9, %p4290_p2 }
  0xc1   : > { %p3950_p11 = por %p3949_p4, %p3948_p8 }
  0xc2   : > { %p3944_p1 = pneg %p3943_p10 }
  0xc4   : > { %p3951_p7 = pnand %p3950_p11, %p3944_p1 }
  0xc6   : > { %3954 = shalt.err (!%p3951_p7)
}
  0xc7   : > { %3441 = dma.hbm_to_vmem [thread:$0]  (!%p4283_p0), %s792_s23, 2048, %s794_s26, %s781_s27, %s4864_s8, %s4864_s8, %s4863_s17  }
  0xc8   : > { %p4873_p5 = scmp.ne.s32.totalorder %s4854_s24, 0 }
  0xc9   : > { %s4874_s18 = sld [smem:[#allocation38_spill]] (!%p4873_p5) }
  0xca   : > { %805 = sbr.rel (%p4873_p5) target bundleno = 3727 (0xe8f), region = 96 }
  0xcf   : > { %p4875_p2 = scmp.eq.s32.totalorder %s4874_s18, 0 }
  0xd1   : > { %4004 = dma.done.wait (%p4875_p2), [#allocation8], 512   ;;  %p4876_p12 = pmov %p4875_p2 }
  0xd2   : > { %p4877_p13 = pmov %p4875_p2 }
  0xd3   : > { %4006 = vsyncadd (%p4876_p12), [#allocation8], 4294966784 }
  0xd4   : > { %4008 = dma.done.wait (%p4877_p13), [#allocation11], 640   ;;  %p4878_p3 = pmov %p4875_p2 }
  0xd5   : > { %s4879_s5 = sld [smem:[#allocation34_spill]]  ;;  %s819_s15 = sand.u32 1, %s4874_s18  }
  0xd6   : > { %4010 = vsyncadd (%p4878_p3), [#allocation11], 4294966656  ;;  %s4880_s25 = sld [smem:[#allocation39_spill]]  ;;  %s820_s17 = scalar_lea.sflag [#allocation14], %s819_s15 }
  0xdb   : > { %s4427_s8 = sand.u32 1, %s4879_s5  }
  0xdc   : > { %s3026_s24 = sshll.u32 %s4427_s8, 6  ;;  %p4881_p0 = scmp.ne.s32.totalorder %s4880_s25, 0 }
  0xdd   : > { %s4430_s30 = scalar_lea.vmem [#allocation13], %s3026_s24 }
  0xde   : > { %4012 = dma.done.wait (%p4881_p0), %s820_s17, 3072  }
  0xdf   : > { %4014 = vsyncadd (%p4881_p0), %s820_s17, 4294964224  ;;  %s3027_s7 = sshll.u32 %s4427_s8, 7  ;;  %s838_s3 = scalar_lea.sflag [#allocation17], %s819_s15 }
  0xe0   : > { %s4437_s6 = scalar_lea.vmem [#allocation15], %s3027_s7  ;;  %s4439_s29 = scalar_lea.vmem [#allocation16], %s3026_s24 }
  0xe1   : > { %4016 = dma.done.wait (%p4881_p0), %s838_s3, 1040  }
  0xe2   : > { %4018 = vsyncadd (%p4881_p0), %s838_s3, 4294966256  ;;  %s849_s9 = scalar_lea.vmem [#allocation18], %s4427_s8  ;;  %s855_s10 = scalar_lea.sflag [#allocation20], %s819_s15 }
  0xe3   : > { %s857_s20 = scalar_lea.vmem [#allocation19], %s4427_s8 }
  0xe4   : > { %4020 = dma.done.wait (%p4881_p0), %s855_s10, 2064  }
  0xe5   : > { %4022 = vsyncadd (%p4881_p0), %s855_s10, 4294965232  ;;  %s4451_s0 = scalar_lea.vmem [#allocation21], %s3027_s7  ;;  %s872_s19 = scalar_lea.sflag [#allocation23], %s819_s15 }
  0xe6   : > { %s4453_s21 = scalar_lea.vmem [#allocation22], %s3027_s7 }
  0xe7   : > { %4024 = dma.done.wait (%p4881_p0), %s872_s19, 2048  }
  0xe8   : > { %4026 = vsyncadd (%p4881_p0), %s872_s19, 4294965248  ;;  %p4882_p6 = pmov %p4875_p2 }
  0xe9   : > { %p4883_p9 = pmov %p4875_p2 }
  0xea   : > { %4028 = dma.done.wait (%p4882_p6), [#allocation23], 1024  }
  0xeb   : > { %4030 = vsyncadd (%p4883_p9), [#allocation23], 4294966272  ;;  %s4884_s23 = sld [smem:[#allocation36_spill]] }
  0xec   : > { %s4885_s27 = sld [smem:[#allocation46_spill]] }
  0xed   : > { %s4886_s22 = sld [smem:[#allocation47_spill]] }
  0xee   : > { %s4887_s15 = sld [smem:[#allocation48_spill]] }
  0xef   : > { %s4888_s3 = sld [smem:[#allocation49_spill]] }
  0xf1   : > { %p970_p10 = scmp.lt.s32.totalorder %s4884_s23, 1  ;;  %p986_p1 = scmp.eq.s32.totalorder %s4884_s23, 0 }
  0xf2   : > { %v3518_v0 = vld [vmem:[#allocation12 + $0x18] sm:$0xff] (%p986_p1)   ;;  %v3519_v1 = vld [vmem:[#allocation12 + $0x10] sm:$0xff] (%p986_p1)   ;;  %v3520_v2 = vld [vmem:[#allocation12 + $0x8] sm:$0xff] (%p986_p1)   ;;  %vm1037_vm0 = vcmask (%p986_p1), 523264   ;;  %s4889_s26 = sld [smem:[#allocation45_spill]] (%p986_p1) }
  0xf3   : > { %s4910_s23 = smov (!%p970_p10, %s4884_s23), 1  ;;  %991 = sbr.rel (!%p986_p1) target bundleno = 461 (0x1cd), region = 144  ;;  %3233 = vmatprep.subr.bf16.mxu0 (%p986_p1), %v3518_v0  ;;  %v992_v3 = vld [vmem:[#allocation7] sm:$0xff] (%p986_p1)  ;;  %v993_v4 = vld [vmem:[#allocation7 + $0x8] sm:$0xff] (%p986_p1)  ;;  %v994_v7 = vld [vmem:[#allocation7 + $0x10] sm:$0xff] (%p986_p1) }
  0xf4   : > { %s972_s16 = scalar_lea.vmem %s4885_s27, %s4910_s23  ;;  %s975_s18 = scalar_lea.vmem %s4886_s22, %s4910_s23  ;;  %3234 = vmatpush3.bf16.msra.mxu0 (%p986_p1), %v3518_v0  ;;  %v996_v5 = vpack.c.bf16 (%p986_p1), %v993_v4, %v992_v3  ;;  %v3521_v6 = vld [vmem:[#allocation12] sm:$0xff] (%p986_p1)   ;;  %v995_v8 = vld [vmem:[#allocation7 + $0x18] sm:$0xff] (%p986_p1)  ;;  %v1097_v10 = vld [vmem:[#allocation10] sm:$0xff] (%p986_p1) }
  0xf5   : > { %s978_s24 = scalar_lea.vmem %s4887_s15, %s4910_s23  ;;  %s981_s10 = scalar_lea.vmem %s4888_s3, %s4910_s23  ;;  %3235 = vmatprep.subr.bf16.mxu0 (%p986_p1), %v3519_v1  ;;  %v997_v9 = vpack.c.bf16 (%p986_p1), %v995_v8, %v994_v7  ;;  %1098 = vst [vmem:[#allocation3] sm:$0xff] (%p986_p1), %v1097_v10  ;;  %1099 = vst [vmem:[#allocation3 + $0x8] sm:$0xff] (%p986_p1), %v1097_v10 }
  0xf6   : > { %3241 = vmatprep.mubr.msk.bf16.mxu0 (%p986_p1), %vm1037_vm0, %v996_v5 }
  0xf8   : > { %3236 = vmatpush3.bf16.msra.mxu0 %v3519_v1  ;;  %v3033_v11 = vld [vmem:[%s4889_s26] ss:$0 sm:$0xff] }
  0xf9   : > { %3237 = vmatprep.subr.bf16.mxu0 %v3520_v2 }
  0xfc   : > { %3238 = vmatpush3.bf16.msra.mxu0 %v3520_v2 }
  0xfd   : > { %3239 = vmatprep.subr.bf16.mxu0 %v3521_v6 }
 0x100   : > { %3240 = vmatpush3.bf16.msra.mxu0 %v3521_v6 }
 0x103   : > { %3242 = vmatmul.mubr.msk.bf16.vlgmr.msra.gmra.mxu0 %vm1037_vm0, %v997_v9 }
 0x1c3   : > { %v3243_v12 = vpop.f32.mrf.mxu0 }
 0x1c4   : > { %v1087_v13 = vadd.f32 %v3243_v12, %v3033_v11 }
 0x1c5   : > { %v1078_v14 = vpop.f32.mrf.mxu0 }
 0x1c6   : > { %1095 = vst [vmem:[#allocation2 + $0x18] sm:$0xff] %v1087_v13  ;;  %v1079_v15 = vadd.f32 %v3033_v11, %v1078_v14 }
 0x1c7   : > { %v3244_v16 = vpop.f32.mrf.mxu0 }
 0x1c8   : > { %1093 = vst [vmem:[#allocation2 + $0x10] sm:$0xff] %v1079_v15  ;;  %v1090_v17 = vadd.f32 %v3244_v16, %v3033_v11 }
 0x1c9   : > { %v1081_v18 = vpop.f32.mrf.mxu0 }
 0x1ca   : > { %1096 = vst [vmem:[#allocation2 + $0x8] sm:$0xff] %v1090_v17  ;;  %v1082_v19 = vadd.f32 %v3033_v11, %v1081_v18 }
 0x1cc   : > { %1094 = vst [vmem:[#allocation2] sm:$0xff] %v1082_v19 }
 0x1cd PF: > { %v1107_v21 = vld [vmem:[#allocation2 + $0x18] sm:$0xff]  ;;  %v3525_v52 = vld [vmem:[%s4437_s6 + $0x64] ss:$8 sps:$4 sm:$0xff]   ;;  %v3527_v53 = vld [vmem:[%s4437_s6 + $0x60] ss:$8 sps:$4 sm:$0xff]   ;;  %v4074_v57 = vmov 0.0  }
 0x1ce   : > { %1115 = vadd.xlane.f32.xlu1 %v1107_v21  ;;  %v3522_v26 = vld [vmem:[%s4437_s6 + $0x74] ss:$8 sps:$4 sm:$0xff]   ;;  %v3524_v27 = vld [vmem:[%s4437_s6 + $0x70] ss:$8 sps:$4 sm:$0xff]   ;;  %3245 = vmatprep.subr.bf16.mxu0 %v4074_v57  ;;  %v3532_v58 = vld [vmem:[%s4437_s6 + $0x44] ss:$8 sps:$4 sm:$0xff]  }
 0x1cf   : > { %v1105_v20 = vld [vmem:[#allocation2 + $0x10] sm:$0xff]  ;;  %1435 = vmatprep.subr.bf16.mxu1 %v3522_v26  ;;  %v3530_v55 = vld [vmem:[%s4430_s30 + $0x38] sm:$0xff]   ;;  %v3535_v60 = vld [vmem:[%s4437_s6 + $0x40] ss:$8 sps:$4 sm:$0xff]   ;;  %v4075_v4 = vmov 0   ;;  %vm4076_vm1 = vmmov 0  }
 0x1d0   : > { %1111 = vadd.xlane.f32.xlu0 %v1105_v20  ;;  %1436 = vmatpush1.bf16.msra.mxu1 %v3524_v27  ;;  %v3528_v54 = vld [vmem:[%s4437_s6 + $0x54] ss:$8 sps:$4 sm:$0xff]   ;;  %v3531_v56 = vld [vmem:[%s4437_s6 + $0x50] ss:$8 sps:$4 sm:$0xff]   ;;  %v3538_v62 = vld [vmem:[%s4430_s30 + $0x28] sm:$0xff]   ;;  %vm1508_vm2 = vcmask 523264  }
 0x1d1   : > { %v4487_v23 = vld [vmem:[#allocation3] sm:$0xff]  ;;  %v1108_v24 = vld [vmem:[#allocation2 + $0x8] sm:$0xff]  ;;  %1437 = vmatprep.subr.bf16.mxu1 %v3525_v52  ;;  %3246 = vmatpush3.bf16.msra.mxu0 %v3530_v55  ;;  %v3534_v59 = vld [vmem:[%s4430_s30 + $0x30] sm:$0xff]   ;;  %vm1635_vm3 = vcmask 1043456   ;;  %vm1607_vm4 = vcmask 195584   ;;  %s4077_s23 = smov 64  }
 0x1d2   : > { %v4489_v25 = vld [vmem:[#allocation3 + $0x8] sm:$0xff]  ;;  %1178 = vadd.xlane.f32.xlu1 %v4487_v23  ;;  %3247 = vmatprep.subr.bf16.mxu0 %v4074_v57  ;;  %v3536_v61 = vld [vmem:[%s4437_s6 + $0x34] ss:$8 sps:$4 sm:$0xff]   ;;  %v3539_v63 = vld [vmem:[%s4437_s6 + $0x30] ss:$8 sps:$4 sm:$0xff]   ;;  %s4894_s8 = sld [smem:[#allocation36_spill]] }
 0x1d3   : > { %v1106_v22 = vld [vmem:[#allocation2] sm:$0xff]  ;;  %v3544_v3 = vld [vmem:[%s4437_s6 + $0x14] ss:$8 sps:$4 sm:$0xff]   ;;  %1467 = vmatprep.mubr.bf16.mxu1 %v4075_v4  ;;  %v3547_v6 = vld [vmem:[%s4437_s6 + $0x10] ss:$8 sps:$4 sm:$0xff]   ;;  %3261 = vmatprep.mubr.msk.bf16.mxu0 %vm4076_vm1, %v4074_v57 }
 0x1d4   : > { %1113 = vadd.xlane.f32.xlu0 %v1106_v22  ;;  %1438 = vmatpush1.bf16.msra.mxu1 %v3527_v53  ;;  %v3540_v0 = vld [vmem:[%s4437_s6 + $0x24] ss:$8 sps:$4 sm:$0xff]   ;;  %v3543_v2 = vld [vmem:[%s4437_s6 + $0x20] ss:$8 sps:$4 sm:$0xff]   ;;  %v3546_v5 = vld [vmem:[%s4430_s30 + $0x18] sm:$0xff]  }
 0x1d5   : > { %1439 = vmatprep.subr.bf16.mxu1 %v3528_v54  ;;  %3248 = vmatpush3.bf16.msra.mxu0 %v3534_v59  ;;  %v3542_v1 = vld [vmem:[%s4430_s30 + $0x20] sm:$0xff]   ;;  %v3550_v8 = vld [vmem:[%s4430_s30 + $0x10] sm:$0xff]   ;;  %v3552_v10 = vld [vmem:[%s4430_s30 + $0x8] sm:$0xff]  }
 0x1d6   : > { %1180 = vadd.xlane.f32.xlu1 %v4489_v25  ;;  %3249 = vmatprep.subr.bf16.mxu0 %v4074_v57  ;;  %v3548_v7 = vld [vmem:[%s4437_s6 + $0x4] ss:$8 sps:$4 sm:$0xff]   ;;  %v3551_v9 = vld [vmem:[%s4437_s6] ss:$8 sps:$4 sm:$0xff]  }
 0x1d7   : > { %v3553_v11 = vld [vmem:[%s4430_s30] sm:$0xff]  }
 0x1d8   : > { %1117 = vadd.xlane.f32.xlu0 %v1108_v24  ;;  %1440 = vmatpush1.bf16.msra.mxu1 %v3531_v56  ;;  %v3043_v54 = vld [vmem:[%s981_s10] ss:$0 sm:$0xff]  ;;  %p2552_p8 = scmp.eq.s32.totalorder %s4894_s8, 1 }
 0x1d9   : > { %1441 = vmatprep.subr.bf16.mxu1 %v3532_v58  ;;  %3250 = vmatpush3.bf16.msra.mxu0 %v3538_v62  ;;  %vm4079_vm5 = vmmov (%p2552_p8), 0   ;;  %s4897_s10 = sld [smem:[#allocation56_spill]] (%p2552_p8) }
 0x1da   : > { %3251 = vmatprep.subr.bf16.mxu0 %v4074_v57 }
 0x1dc   : > { %1442 = vmatpush1.bf16.msra.mxu1 %v3535_v60 }
 0x1dd   : > { %1443 = vmatprep.subr.bf16.mxu1 %v3536_v61  ;;  %3252 = vmatpush3.bf16.msra.mxu0 %v3542_v1 }
 0x1de   : > { %3253 = vmatprep.subr.bf16.mxu0 %v4074_v57 }
 0x1e0   : > { %1444 = vmatpush1.bf16.msra.mxu1 %v3539_v63 }
 0x1e1   : > { %1445 = vmatprep.subr.bf16.mxu1 %v3540_v0  ;;  %3254 = vmatpush3.bf16.msra.mxu0 %v3546_v5 }
 0x1e2   : > { %3255 = vmatprep.subr.bf16.mxu0 %v4074_v57 }
 0x1e4   : > { %1446 = vmatpush1.bf16.msra.mxu1 %v3543_v2 }
 0x1e5   : > { %1447 = vmatprep.subr.bf16.mxu1 %v3544_v3  ;;  %3256 = vmatpush3.bf16.msra.mxu0 %v3550_v8 }
 0x1e6   : > { %3257 = vmatprep.subr.bf16.mxu0 %v4074_v57 }
 0x1e8   : > { %1448 = vmatpush1.bf16.msra.mxu1 %v3547_v6 }
 0x1e9   : > { %1449 = vmatprep.subr.bf16.mxu1 %v3548_v7  ;;  %3258 = vmatpush3.bf16.msra.mxu0 %v3552_v10 }
 0x1ea   : > { %3259 = vmatprep.subr.bf16.mxu0 %v4074_v57 }
 0x1ec   : > { %1450 = vmatpush1.bf16.msra.mxu1 %v3551_v9 }
 0x1ed   : > { %3273 = vmatprep.subr.bf16.mxu1 %v4074_v57  ;;  %3260 = vmatpush3.bf16.msra.mxu0 %v3553_v11 }
 0x1ee   : > { %3265 = vmatprep.subr.bf16.mxu0 %v4074_v57 }
 0x257   : > { %v1116_v29 = vpop.xlane.xlu1 %1115 }
 0x258   : > { %v1122_v31 = vmul.f32 0.0078125, %v1116_v29 }
 0x259   : > { %v1112_v28 = vpop.xlane.xlu0 %1111 }
 0x25a   : > { %v1120_v30 = vmul.f32 0.0078125, %v1112_v28  ;;  %v4497_v33 = vsub.f32 %v1107_v21, %v1122_v31 }
 0x25b   : > { %v1179_v35 = vpop.xlane.xlu1 %1178 }
 0x25c   : > { %v4495_v32 = vsub.f32 %v1105_v20, %v1120_v30  ;;  %v1182_v38 = vmul.f32 0.0078125, %v1179_v35  ;;  %v1130_v41 = vmul.f32 %v4497_v33, %v4497_v33 }
 0x25d   : > { %v1114_v34 = vpop.xlane.xlu0 %1113 }
 0x25e   : > { %v1121_v36 = vmul.f32 0.0078125, %v1114_v34  ;;  %v1128_v37 = vmul.f32 %v4495_v32, %v4495_v32  ;;  %v4504_v40 = vsub.f32 %v4487_v23, %v1182_v38 }
 0x25f   : > { %v1181_v43 = vpop.xlane.xlu1 %1180 }
 0x260   : > { %v4501_v39 = vsub.f32 %v1106_v22, %v1121_v36  ;;  %1132 = vadd.xlane.f32.xlu0 %v1128_v37  ;;  %v1183_v46 = vmul.f32 0.0078125, %v1181_v43  ;;  %v1186_v49 = vmul.f32 %v4504_v40, %v4504_v40  ;;  %v3040_v36 = vld [vmem:[%s972_s16] ss:$0 sm:$0xff] }
 0x261   : > { %v1118_v42 = vpop.xlane.xlu0 %1117  ;;  %v3041_v43 = vld [vmem:[%s975_s18] ss:$0 sm:$0xff]  ;;  %s4896_s18 = sld [smem:[#allocation55_spill]] (%p2552_p8) }
 0x262   : > { %v1123_v44 = vmul.f32 0.0078125, %v1118_v42  ;;  %v1129_v45 = vmul.f32 %v4501_v39, %v4501_v39  ;;  %v4513_v48 = vsub.f32 %v4489_v25, %v1183_v46 }
 0x264   : > { %v4510_v47 = vsub.f32 %v1108_v24, %v1123_v44  ;;  %1136 = vadd.xlane.f32.xlu0 %v1130_v41  ;;  %1134 = vadd.xlane.f32.xlu1 %v1129_v45  ;;  %v1187_v51 = vmul.f32 %v4513_v48, %v4513_v48 }
 0x266   : > { %v1131_v50 = vmul.f32 %v4510_v47, %v4510_v47 }
 0x268   : > { %1138 = vadd.xlane.f32.xlu0 %v1131_v50  ;;  %1188 = vadd.xlane.f32.xlu1 %v1186_v49 }
 0x26c   : > { %1190 = vadd.xlane.f32.xlu1 %v1187_v51 }
 0x2e9   : > { %v1133_v12 = vpop.xlane.xlu0 %1132 }
 0x2ea   : > { %v1140_v13 = vmul.f32 0.0078125, %v1133_v12 }
 0x2ec   : > { %v1144_v14 = vadd.f32 1e-05, %v1140_v13 }
 0x2ed   : > { %v1137_v15 = vpop.xlane.xlu0 %1136  ;;  %v1135_v16 = vpop.xlane.xlu1 %1134 }
 0x2ee   : > { %3603 = vrsqrt.f32 %v1144_v14  ;;  %v1142_v17 = vmul.f32 0.0078125, %v1137_v15  ;;  %v1141_v18 = vmul.f32 0.0078125, %v1135_v16 }
 0x2f0   : > { %v1145_v19 = vadd.f32 1e-05, %v1141_v18  ;;  %v1146_v20 = vadd.f32 1e-05, %v1142_v17 }
 0x2f1   : > { %v1189_v21 = vpop.xlane.xlu1 %1188  ;;  %v1139_v22 = vpop.xlane.xlu0 %1138 }
 0x2f2   : > { %v1192_v24 = vmul.f32 0.0078125, %v1189_v21  ;;  %3605 = vrsqrt.f32 %v1145_v19  ;;  %v1143_v27 = vmul.f32 0.0078125, %v1139_v22 }
 0x2f3   : > { %3607 = vrsqrt.f32 %v1146_v20 }
 0x2f4   : > { %v1194_v26 = vadd.f32 1e-05, %v1192_v24  ;;  %v1147_v31 = vadd.f32 1e-05, %v1143_v27 }
 0x2f5   : > { %v1191_v28 = vpop.xlane.xlu1 %1190 }
 0x2f6   : > { %v1193_v29 = vmul.f32 0.0078125, %v1191_v28  ;;  %3609 = vrsqrt.f32 %v1194_v26 }
 0x2f8   : > { %v1195_v30 = vadd.f32 1e-05, %v1193_v29 }
 0x2fa   : > { %3611 = vrsqrt.f32 %v1195_v30 }
 0x2fb   : > { %v3604_v34 = vpop.eup %3603  ;;  %3613 = vrsqrt.f32 %v1147_v31 }
 0x2fc   : > { %v1152_v35 = vmul.f32 %v3604_v34, %v4495_v32  ;;  %v3042_v32 = vld [vmem:[%s978_s24] ss:$0 sm:$0xff] }
 0x2fe   : > { %v1162_v41 = vmul.f32 %v3040_v36, %v1152_v35 }
 0x2ff   : > { %v3606_v37 = vpop.eup %3605 }
 0x300   : > { %v1153_v38 = vmul.f32 %v3606_v37, %v4501_v39  ;;  %v3608_v42 = vpop.eup %3607  ;;  %v1172_v46 = vadd.f32 %v3041_v43, %v1162_v41 }
 0x301   : > { %v1154_v39 = vmul.f32 %v3608_v42, %v4497_v33 }
 0x302   : > { %v1163_v44 = vmul.f32 %v3040_v36, %v1153_v38 }
 0x303   : > { %v3610_v45 = vpop.eup %3609  ;;  %v1164_v56 = vmul.f32 %v3040_v36, %v1154_v39 }
 0x304   : > { %v1173_v49 = vadd.f32 %v3041_v43, %v1163_v44  ;;  %v1198_v50 = vmul.f32 %v3610_v45, %v4504_v40 }
 0x305   : > { %v1174_v61 = vadd.f32 %v3041_v43, %v1164_v56 }
 0x306   : > { %v1336_v52 = vpack.c.bf16 %v1173_v49, %v1172_v46  ;;  %v1206_v53 = vmul.f32 %v3042_v32, %v1198_v50 }
 0x307   : > { %v3612_v51 = vpop.eup %3611 }
 0x308   : > { %v1199_v55 = vmul.f32 %v3612_v51, %v4513_v48  ;;  %1468 = vmatmul.mubr.bf16.vlgmr.msra.gmra.mxu1 %v1336_v52  ;;  %v3614_v58 = vpop.eup %3613  ;;  %v1214_v60 = vadd.f32 %v3043_v54, %v1206_v53 }
 0x309   : > { %1477 = vmatprep.mubr.bf16.mxu1 %v4075_v4  ;;  %v1155_v33 = vmul.f32 %v3614_v58, %v4510_v47 }
 0x30a   : > { %v1207_v59 = vmul.f32 %v3042_v32, %v1199_v55  ;;  %v1337_v63 = vpack.c.bf16 %v1174_v61, %v1214_v60 }
 0x30b   : > { %v1165_v0 = vmul.f32 %v3040_v36, %v1155_v33 }
 0x30c   : > { %v1215_v40 = vadd.f32 %v3043_v54, %v1207_v59 }
 0x30d   : > { %v1175_v48 = vadd.f32 %v3041_v43, %v1165_v0 }
 0x30e   : > { %v1222_v62 = vpack.c.bf16 %v1215_v40, %v1214_v60 }
 0x30f   : > { %v1338_v1 = vpack.c.bf16 %v1215_v40, %v1175_v48 }
 0x310   : > { %3262 = vmatmul.mubr.bf16.vlgmr.msra.gmra.mxu0 %v1222_v62  ;;  %1478 = vmatmul.mubr.bf16.gmra.mxu1 %v1337_v63 }
 0x311   : > { %3269 = vmatprep.mubr.msk.bf16.mxu0 %vm4076_vm1, %v4074_v57  ;;  %1487 = vmatprep.mubr.bf16.mxu1 %v4075_v4 }
 0x318   : > { %1488 = vmatmul.mubr.bf16.gmra.mxu1 %v1338_v1 }
 0x319   : > { %3277 = vmatprep.mubr.msk.bf16.mxu1 %vm4076_vm1, %v4074_v57 }
 0x3c8   : > { %v1469_v2 = vpop.f32.mrf.mxu1 }
 0x3ca   : > { %v1471_v3 = vpop.f32.mrf.mxu1 }
 0x3cc   : > { %v1473_v5 = vpop.f32.mrf.mxu1 }
 0x3cd   : > { %v4593_v16 = vpack.c.bf16 %v1473_v5, %v1469_v2 }
 0x3ce   : > { %v1475_v47 = vpop.f32.mrf.mxu1 }
 0x3cf   : > { %v1513_v19 = vsel %vm1508_vm2, %v4593_v16, 0  ;;  %v4610_v31 = vpack.c.bf16 %v1475_v47, %v1471_v3 }
 0x3d0   : > { %v1321_v6 = vpop.f32.mrf.mxu0  ;;  %v1479_v7 = vpop.f32.mrf.mxu1 }
 0x3d1   : > { %v4588_v8 = vpack.c.bf16 %v1479_v7, %v1479_v7  ;;  %v1328_v22 = vmul.f32 0.125, %v1321_v6 }
 0x3d2   : > { %v3263_v9 = vpop.f32.mrf.mxu0  ;;  %v1481_v10 = vpop.f32.mrf.mxu1 }
 0x3d3   : > { %v1516_v11 = vsel %vm1508_vm2, %v4588_v8, 0  ;;  %v4600_v26 = vpack.c.bf16 %v1481_v10, %v1481_v10  ;;  %v1498_v28 = vpack.c.bf16 %v1328_v22, %v1328_v22 }
 0x3d4   : > { %v1324_v12 = vpop.f32.mrf.mxu0  ;;  %v1483_v13 = vpop.f32.mrf.mxu1  ;;  %3266 = vmatpush3.bf16.xpose.msra.mxu0 %v1516_v11 }
 0x3d5   : > { %3267 = vmatprep.subr.bf16.mxu0 %v4074_v57  ;;  %v1637_v29 = vsel %vm1635_vm3, %v4600_v26, 0  ;;  %v1329_v35 = vmul.f32 0.125, %v1324_v12 }
 0x3d6   : > { %v3264_v14 = vpop.f32.mrf.mxu0  ;;  %v1485_v15 = vpop.f32.mrf.mxu1 }
 0x3d7   : > { %v1499_v36 = vpack.c.bf16 %v1329_v35, %v1329_v35 }
 0x3d8   : > { %v1489_v17 = vpop.f32.mrf.mxu1 }
 0x3d9   : > { %v1504_v30 = vpack.c.bf16 %v1489_v17, %v1483_v13 }
 0x3da   : > { %v1491_v18 = vpop.f32.mrf.mxu1 }
 0x3db   : > { %v4597_v20 = vpack.c.bf16 %v1491_v18, %v1485_v15  ;;  %v1562_v34 = vsel %vm1508_vm2, %v1504_v30, 0 }
 0x3dc   : > { %v1493_v21 = vpop.f32.mrf.mxu1  ;;  %3268 = vmatpush3.bf16.xpose.msra.mxu0 %v1513_v19 }
 0x3dd   : > { %v1506_v24 = vpack.c.bf16 %v1493_v21, %v1493_v21  ;;  %3281 = vmatprep.subr.bf16.mxu0 %v4074_v57 }
 0x3de   : > { %v1495_v44 = vpop.f32.mrf.mxu1 }
 0x3df   : > { %v1565_v27 = vsel %vm1508_vm2, %v1506_v24, 0  ;;  %v1507_v48 = vpack.c.bf16 %v1495_v44, %v1495_v44 }
 0x3e0   : > { %3274 = vmatpush3.bf16.xpose.msra.mxu1 %v1565_v27 }
 0x3e1   : > { %3275 = vmatprep.subr.bf16.mxu1 %v4074_v57  ;;  %v1683_v47 = vsel %vm1635_vm3, %v1507_v48, 0 }
 0x3e3   : > { %3270 = vmatmul.mubr.msk.bf16.vlgmr.msra.gmra.mxu0 %vm1508_vm2, %v1498_v28 }
 0x3e4   : > { %3282 = vmatpush3.bf16.msra.mxu0 %v1637_v29  ;;  %3285 = vmatprep.mubr.msk.bf16.mxu0 %vm4076_vm1, %v4074_v57 }
 0x3e5   : > { %3283 = vmatprep.subr.bf16.mxu0 %v4074_v57 }
 0x3e8   : > { %3276 = vmatpush3.bf16.xpose.msra.mxu1 %v1562_v34  ;;  %3284 = vmatpush3.bf16.msra.mxu0 %v4610_v31 }
 0x3e9   : > { %3297 = vmatprep.subr.bf16.mxu1 %v4074_v57  ;;  %3289 = vmatprep.subr.bf16.mxu0 %v4074_v57 }
 0x3ef   : > { %3278 = vmatmul.mubr.msk.bf16.vlgmr.msra.gmra.mxu1 %vm1508_vm2, %v1499_v36 }
 0x3f0   : > { %3301 = vmatprep.mubr.msk.bf16.mxu1 %vm4076_vm1, %v4074_v57 }
 0x4a3   : > { %v1552_v37 = vpop.f32.mrf.mxu0 }
 0x4a4   : > { %v1608_v38 = vsel %vm1607_vm4, %v1552_v37, -inf }
 0x4a5   : > { %1609 = vmax.xlane.f32.xlu0 %v1608_v38  ;;  %v3271_v41 = vpop.f32.mrf.mxu0 }
 0x4a7   : > { %v1555_v42 = vpop.f32.mrf.mxu0 }
 0x4a9   : > { %v3272_v43 = vpop.f32.mrf.mxu0 }
 0x4af   : > { %v1601_v45 = vpop.f32.mrf.mxu1 }
 0x4b0   : > { %v1611_v32 = vsel %vm1607_vm4, %v1601_v45, -inf }
 0x4b1   : > { %1612 = vmax.xlane.f32.xlu1 %v1611_v32  ;;  %v3279_v46 = vpop.f32.mrf.mxu1 }
 0x4b3   : > { %v1604_v49 = vpop.f32.mrf.mxu1 }
 0x4b5   : > { %v3280_v50 = vpop.f32.mrf.mxu1 }
 0x4c2   : > { %1799 = vrot.lane.b32.xlu1 %v1506_v24, %s4077_s23 }
 0x52e   : > { %v1610_v39 = vpop.xlane.xlu0 %1609 }
 0x52f   : > { %v1614_v51 = vsub.f32 %v1552_v37, %v1610_v39 }
 0x531   : > { %v1616_v52 = vmul.f32 1.442695, %v1614_v51 }
 0x533   : > { %3615 = vpow2.f32 %v1616_v52 }
 0x53a   : > { %v1613_v53 = vpop.xlane.xlu1 %1612 }
 0x53b   : > { %v1615_v54 = vsub.f32 %v1601_v45, %v1613_v53 }
 0x53d   : > { %v1618_v55 = vmul.f32 1.442695, %v1615_v54 }
 0x53e   : > { %v1800_v62 = vpop.permute.xlu1 %1799 }
 0x53f   : > { %3617 = vpow2.f32 %v1618_v55  ;;  %v1808_v10 = vsel %vm1508_vm2, %v1800_v62, 0 }
 0x540   : > { %v3616_v56 = vpop.eup %3615 }
 0x541   : > { %v1620_v58 = vsel %vm1607_vm4, %v3616_v56, 0.0 }
 0x542   : > { %1621 = vadd.xlane.f32.xlu0 %v1620_v58 }
 0x54c   : > { %v3618_v59 = vpop.eup %3617 }
 0x54d   : > { %v1623_v60 = vsel %vm1607_vm4, %v3618_v59, 0.0 }
 0x54e   : > { %1624 = vadd.xlane.f32.xlu1 %v1623_v60 }
 0x558   : > { %1741 = vrot.lane.b32.xlu0 %v4588_v8, %s4077_s23 }
 0x55c   : > { %1735 = vrot.lane.b32.xlu0 %v1498_v28, %s4077_s23 }
 0x55f   : > { %1739 = vrot.lane.b32.xlu1 %v4593_v16, %s4077_s23 }
 0x563   : > { %1797 = vrot.lane.b32.xlu1 %v1504_v30, %s4077_s23 }
 0x567   : > { %1793 = vrot.lane.b32.xlu1 %v1499_v36, %s4077_s23 }
 0x5cb   : > { %v1622_v40 = vpop.xlane.xlu0 %1621 }
 0x5cc   : > { %3619 = vrcp.f32 %v1622_v40  ;;  %v3558_v40 = vld [vmem:[%s4439_s29 + $0x38] sm:$0xff]  }
 0x5cf   : > { %v1742_v61 = vpop.permute.xlu0 %1741 }
 0x5d0   : > { %v1750_v33 = vsel %vm1508_vm2, %v1742_v61, 0 }
 0x5d1   : > { %3298 = vmatpush3.bf16.xpose.msra.mxu1 %v1750_v33  ;;  %v3559_v33 = vld [vmem:[%s4439_s29 + $0x30] sm:$0xff]  }
 0x5d2   : > { %3299 = vmatprep.subr.bf16.mxu1 %v4074_v57 }
 0x5d3   : > { %v1736_v6 = vpop.permute.xlu0 %1735 }
 0x5d7   : > { %v1625_v63 = vpop.xlane.xlu1 %1624 }
 0x5d8   : > { %3621 = vrcp.f32 %v1625_v63  ;;  %v3554_v63 = vld [vmem:[%s4439_s29 + $0x18] sm:$0xff]  }
 0x5d9   : > { %v3620_v0 = vpop.eup %3619 }
 0x5da   : > { %v1627_v1 = vmul.f32 %v3620_v0, %v3616_v56 }
 0x5db   : > { %v1740_v2 = vpop.permute.xlu1 %1739 }
 0x5dc   : > { %v1747_v3 = vsel %vm1508_vm2, %v1740_v2, 0  ;;  %v1630_v5 = vpack.c.bf16 %v1627_v1, %v1627_v1  ;;  %v3556_v1 = vld [vmem:[%s4439_s29 + $0x8] sm:$0xff]   ;;  %v3557_v2 = vld [vmem:[%s4439_s29] sm:$0xff]  }
 0x5dd   : > { %3300 = vmatpush3.bf16.xpose.msra.mxu1 %v1747_v3  ;;  %v3560_v3 = vld [vmem:[%s4439_s29 + $0x28] sm:$0xff]  }
 0x5de   : > { %3286 = vmatmul.mubr.msk.bf16.vlgmr.msra.gmra.mxu0 %vm1607_vm4, %v1630_v5  ;;  %3313 = vmatprep.subr.bf16.mxu1 %v4074_v57  ;;  %v3561_v5 = vld [vmem:[%s4439_s29 + $0x20] sm:$0xff]  }
 0x5df   : > { %3290 = vmatpush3.bf16.msra.mxu0 %v1683_v47  ;;  %3293 = vmatprep.mubr.msk.bf16.mxu0 %vm4076_vm1, %v4074_v57  ;;  %v1798_v11 = vpop.permute.xlu1 %1797 }
 0x5e0   : > { %3291 = vmatprep.subr.bf16.mxu0 %v4074_v57  ;;  %v1805_v12 = vsel %vm1508_vm2, %v1798_v11, 0 }
 0x5e3   : > { %3292 = vmatpush3.bf16.msra.mxu0 %v4597_v20  ;;  %v1794_v13 = vpop.permute.xlu1 %1793 }
 0x5e4   : > { %3302 = vmatmul.mubr.msk.bf16.vlgmr.msra.gmra.mxu1 %vm1508_vm2, %v1736_v6  ;;  %3305 = vmatprep.subr.bf16.mxu0 %v4074_v57 }
 0x5e5   : > { %v3622_v7 = vpop.eup %3621  ;;  %3317 = vmatprep.mubr.msk.bf16.mxu1 %vm4076_vm1, %v4074_v57 }
 0x5e6   : > { %v1629_v8 = vmul.f32 %v3622_v7, %v3618_v59 }
 0x5e8   : > { %v1631_v9 = vpack.c.bf16 %v1629_v8, %v1629_v8 }
 0x5ea   : > { %3294 = vmatmul.mubr.msk.bf16.vlgmr.msra.gmra.mxu0 %vm1607_vm4, %v1631_v9 }
 0x5eb   : > { %3306 = vmatpush3.bf16.xpose.msra.mxu0 %v1808_v10  ;;  %3309 = vmatprep.mubr.msk.bf16.mxu0 %vm4076_vm1, %v4074_v57 }
 0x5ec   : > { %3307 = vmatprep.subr.bf16.mxu0 %v4074_v57 }
 0x5f3   : > { %3308 = vmatpush3.bf16.xpose.msra.mxu0 %v1805_v12 }
 0x5f4   : > { %3321 = vmatprep.subr.bf16.mxu0 %v4074_v57 }
 0x5fa   : > { %3310 = vmatmul.mubr.msk.bf16.vlgmr.msra.gmra.mxu0 %vm1508_vm2, %v1794_v13 }
 0x5fb   : > { %3325 = vmatprep.mubr.msk.bf16.mxu0 %vm4076_vm1, %v4074_v57 }
 0x69e   : > { %v4655_v14 = vpop.f32.mrf.mxu0 }
 0x6a0   : > { %v3287_v15 = vpop.f32.mrf.mxu0 }
 0x6a2   : > { %v1676_v16 = vpop.f32.mrf.mxu0 }
 0x6a4   : > { %v3288_v17 = vpop.f32.mrf.mxu0  ;;  %v1786_v18 = vpop.f32.mrf.mxu1 }
 0x6a5   : > { %v1850_v19 = vsel %vm1607_vm4, %v1786_v18, -inf }
 0x6a6   : > { %1851 = vmax.xlane.f32.xlu0 %v1850_v19  ;;  %v3303_v21 = vpop.f32.mrf.mxu1 }
 0x6a8   : > { %v1789_v22 = vpop.f32.mrf.mxu1 }
 0x6aa   : > { %v4658_v24 = vpop.f32.mrf.mxu0  ;;  %v3304_v27 = vpop.f32.mrf.mxu1 }
 0x6ab   : > { %v1725_v28 = vpack.c.bf16 %v4658_v24, %v4655_v14 }
 0x6ac   : > { %v3295_v29 = vpop.f32.mrf.mxu0 }
 0x6ae   : > { %v1722_v30 = vpop.f32.mrf.mxu0 }
 0x6b0   : > { %v3296_v34 = vpop.f32.mrf.mxu0 }
 0x6ba   : > { %v1844_v35 = vpop.f32.mrf.mxu0 }
 0x6bb   : > { %v1853_v36 = vsel %vm1607_vm4, %v1844_v35, -inf }
 0x6bc   : > { %1854 = vmax.xlane.f32.xlu1 %v1853_v36  ;;  %v3311_v37 = vpop.f32.mrf.mxu0 }
 0x6bd   : > { %v3564_v37 = vld [vmem:[%s4451_s0 + $0x74] ss:$8 sps:$4 sm:$0xff]  }
 0x6be   : > { %v1847_v38 = vpop.f32.mrf.mxu0 }
 0x6bf   : > { %v3562_v38 = vld [vmem:[%s4451_s0 + $0x70] ss:$8 sps:$4 sm:$0xff]  }
 0x6c0   : > { %v3312_v41 = vpop.f32.mrf.mxu0 }
 0x6c1   : > { %v3567_v41 = vld [vmem:[%s4451_s0 + $0x64] ss:$8 sps:$4 sm:$0xff]  }
 0x6cd   : > { %1931 = vrot.lane.b32.xlu1 %v1507_v48, %s4077_s23  ;;  %v3555_v48 = vld [vmem:[%s4439_s29 + $0x10] sm:$0xff]  }
 0x6d1   : > { %1876 = vrot.lane.b32.xlu1 %v4610_v31, %s4077_s23 }
 0x6d5   : > { %1929 = vrot.lane.b32.xlu1 %v4597_v20, %s4077_s23 }
 0x72f   : > { %v1852_v42 = vpop.xlane.xlu0 %1851 }
 0x730   : > { %v1856_v43 = vsub.f32 %v1786_v18, %v1852_v42  ;;  %v3565_v42 = vld [vmem:[%s4451_s0 + $0x60] ss:$8 sps:$4 sm:$0xff]  }
 0x732   : > { %v1858_v44 = vmul.f32 1.442695, %v1856_v43  ;;  %v3570_v43 = vld [vmem:[%s4451_s0 + $0x54] ss:$8 sps:$4 sm:$0xff]  }
 0x734   : > { %3623 = vpow2.f32 %v1858_v44  ;;  %v3568_v44 = vld [vmem:[%s4451_s0 + $0x50] ss:$8 sps:$4 sm:$0xff]  }
 0x741   : > { %v3624_v45 = vpop.eup %3623 }
 0x742   : > { %v1862_v32 = vsel %vm1607_vm4, %v3624_v45, 0.0 }
 0x743   : > { %1863 = vadd.xlane.f32.xlu0 %v1862_v32  ;;  %v3571_v32 = vld [vmem:[%s4451_s0 + $0x40] ss:$8 sps:$4 sm:$0xff]  }
 0x745   : > { %v1855_v46 = vpop.xlane.xlu1 %1854 }
 0x746   : > { %v1857_v49 = vsub.f32 %v1844_v35, %v1855_v46  ;;  %v3576_v46 = vld [vmem:[%s4451_s0 + $0x34] ss:$8 sps:$4 sm:$0xff]  }
 0x748   : > { %v1860_v50 = vmul.f32 1.442695, %v1857_v49  ;;  %v3574_v49 = vld [vmem:[%s4451_s0 + $0x30] ss:$8 sps:$4 sm:$0xff]  }
 0x749   : > { %v1932_v39 = vpop.permute.xlu1 %1931 }
 0x74a   : > { %3625 = vpow2.f32 %v1860_v50  ;;  %v1938_v51 = vsel %vm1635_vm3, %v1932_v39, 0  ;;  %v3579_v50 = vld [vmem:[%s4451_s0 + $0x24] ss:$8 sps:$4 sm:$0xff]   ;;  %v3577_v39 = vld [vmem:[%s4451_s0 + $0x20] ss:$8 sps:$4 sm:$0xff]  }
 0x74b   : > { %3322 = vmatpush3.bf16.msra.mxu0 %v1938_v51  ;;  %v3580_v51 = vld [vmem:[%s4451_s0 + $0x10] ss:$8 sps:$4 sm:$0xff]  }
 0x74c   : > { %3323 = vmatprep.subr.bf16.mxu0 %v4074_v57 }
 0x74d   : > { %v1877_v31 = vpop.permute.xlu1 %1876 }
 0x751   : > { %v1930_v20 = vpop.permute.xlu1 %1929 }
 0x752   : > { %3324 = vmatpush3.bf16.msra.mxu0 %v1930_v20  ;;  %v3585_v20 = vld [vmem:[%s4451_s0 + $0x4] ss:$8 sps:$4 sm:$0xff]  }
 0x753   : > { %3341 = vmatprep.subr.bf16.mxu0 %v4074_v57 }
 0x757   : > { %v3626_v52 = vpop.eup %3625 }
 0x758   : > { %v1865_v53 = vsel %vm1607_vm4, %v3626_v52, 0.0 }
 0x759   : > { %1866 = vadd.xlane.f32.xlu0 %v1865_v53 }
 0x76f   : > { %1878 = vrot.lane.b32.xlu0 %v4600_v26, %s4077_s23 }
 0x7cc   : > { %v1864_v54 = vpop.xlane.xlu0 %1863 }
 0x7cd   : > { %3627 = vrcp.f32 %v1864_v54 }
 0x7da   : > { %v3628_v56 = vpop.eup %3627 }
 0x7db   : > { %v1869_v60 = vmul.f32 %v3628_v56, %v3624_v45  ;;  %v3573_v45 = vld [vmem:[%s4451_s0 + $0x44] ss:$8 sps:$4 sm:$0xff]  }
 0x7dd   : > { %v1872_v61 = vpack.c.bf16 %v1869_v60, %v1869_v60 }
 0x7e2   : > { %v1867_v55 = vpop.xlane.xlu0 %1866 }
 0x7e3   : > { %3629 = vrcp.f32 %v1867_v55 }
 0x7e6   : > { %v1879_v58 = vpop.permute.xlu0 %1878 }
 0x7e7   : > { %v1885_v59 = vsel %vm1635_vm3, %v1879_v58, 0 }
 0x7e8   : > { %3314 = vmatpush3.bf16.msra.mxu1 %v1885_v59 }
 0x7e9   : > { %3315 = vmatprep.subr.bf16.mxu1 %v4074_v57 }
 0x7ec   : > { %3316 = vmatpush3.bf16.msra.mxu1 %v1877_v31  ;;  %v3582_v31 = vld [vmem:[%s4451_s0 + $0x14] ss:$8 sps:$4 sm:$0xff]  }
 0x7ed   : > { %3329 = vmatprep.subr.bf16.mxu1 %v4074_v57 }
 0x7ef   : > { %3318 = vmatmul.mubr.msk.bf16.vlgmr.msra.gmra.mxu1 %vm1607_vm4, %v1872_v61  ;;  %v3086_v61 = vld [vmem:[%s849_s9] ss:$0 sm:$0xff] }
 0x7f0   : > { %v3630_v26 = vpop.eup %3629  ;;  %3330 = vmatpush3.bf16.msra.mxu1 %v3558_v40  ;;  %3337 = vmatprep.mubr.msk.bf16.mxu1 %vm4076_vm1, %v4074_v57 }
 0x7f1   : > { %v1871_v62 = vmul.f32 %v3630_v26, %v3626_v52  ;;  %3331 = vmatprep.subr.bf16.mxu1 %v4074_v57  ;;  %v3583_v52 = vld [vmem:[%s4451_s0] ss:$8 sps:$4 sm:$0xff]  }
 0x7f3   : > { %v1873_v0 = vpack.c.bf16 %v1871_v62, %v1871_v62 }
 0x7f4   : > { %3332 = vmatpush3.bf16.msra.mxu1 %v3559_v33 }
 0x7f5   : > { %3326 = vmatmul.mubr.msk.bf16.vlgmr.msra.gmra.mxu0 %vm1607_vm4, %v1873_v0  ;;  %3333 = vmatprep.subr.bf16.mxu1 %v4074_v57 }
 0x7f6   : > { %3342 = vmatpush3.bf16.msra.mxu0 %v3554_v63  ;;  %3349 = vmatprep.mubr.msk.bf16.mxu0 %vm4076_vm1, %v4074_v57  ;;  %v3087_v63 = vld [vmem:[%s857_s20] ss:$0 sm:$0xff]  ;;  %s4895_s20 = sld [smem:[#allocation54_spill]] (%p2552_p8) }
 0x7f7   : > { %3343 = vmatprep.subr.bf16.mxu0 %v4074_v57 }
 0x7f8   : > { %3334 = vmatpush3.bf16.msra.mxu1 %v3560_v3 }
 0x7f9   : > { %3335 = vmatprep.subr.bf16.mxu1 %v4074_v57 }
 0x7fa   : > { %3344 = vmatpush3.bf16.msra.mxu0 %v3555_v48 }
 0x7fb   : > { %3345 = vmatprep.subr.bf16.mxu0 %v4074_v57 }
 0x7fc   : > { %3336 = vmatpush3.bf16.msra.mxu1 %v3561_v5  ;;  %v3587_v5 = vld [vmem:[%s4453_s21 + $0x78] sm:$0xff]  }
 0x7fd   : > { %2285 = vmatprep.subr.bf16.mxu1 %v3564_v37 }
 0x7fe   : > { %3346 = vmatpush3.bf16.msra.mxu0 %v3556_v1 }
 0x7ff   : > { %3347 = vmatprep.subr.bf16.mxu0 %v4074_v57 }
 0x802   : > { %3348 = vmatpush3.bf16.msra.mxu0 %v3557_v2 }
 0x803   : > { %3202 = vmatprep.subr.bf16.mxu0 %v3587_v5 }
 0x805   : > { %3350 = vmatmul.mubr.msk.bf16.vlgmr.msra.gmra.mxu0 %vm1508_vm2, %v1725_v28 }
 0x8af   : > { %v1921_v47 = vpop.f32.mrf.mxu1 }
 0x8b1   : > { %v3319_v6 = vpop.f32.mrf.mxu1 }
 0x8b2   : > { %v3589_v6 = vld [vmem:[%s4453_s21 + $0x70] sm:$0xff]  }
 0x8b3   : > { %v1924_v7 = vpop.f32.mrf.mxu1 }
 0x8b4   : > { %v3590_v7 = vld [vmem:[%s4453_s21 + $0x30] sm:$0xff]  }
 0x8b5   : > { %v3320_v8 = vpop.f32.mrf.mxu1  ;;  %v1974_v9 = vpop.f32.mrf.mxu0 }
 0x8b6   : > { %v1980_v10 = vpack.c.bf16 %v1974_v9, %v1921_v47  ;;  %v3588_v47 = vld [vmem:[%s4453_s21 + $0x38] sm:$0xff]   ;;  %v3591_v8 = vld [vmem:[%s4453_s21 + $0x68] sm:$0xff]  }
 0x8b7   : > { %v3327_v11 = vpop.f32.mrf.mxu0  ;;  %3203 = vmatpush3.bf16.msra.mxu0 %v3588_v47  ;;  %v3592_v9 = vld [vmem:[%s4453_s21 + $0x28] sm:$0xff]  }
 0x8b8   : > { %3338 = vmatmul.mubr.msk.bf16.vlgmr.msra.gmra.mxu1 %vm1508_vm2, %v1980_v10  ;;  %3204 = vmatprep.subr.bf16.mxu0 %v3589_v6  ;;  %v3593_v10 = vld [vmem:[%s4453_s21 + $0x60] sm:$0xff]  }
 0x8b9   : > { %v1977_v12 = vpop.f32.mrf.mxu0  ;;  %2317 = vmatprep.mubr.bf16.mxu1 %v4075_v4  ;;  %2286 = vmatpush1.bf16.msra.mxu1 %v3562_v38  ;;  %v3594_v11 = vld [vmem:[%s4453_s21 + $0x20] sm:$0xff]  }
 0x8ba   : > { %2287 = vmatprep.subr.bf16.mxu1 %v3567_v41  ;;  %v3595_v12 = vld [vmem:[%s4453_s21 + $0x58] sm:$0xff]  }
 0x8bb   : > { %v3328_v13 = vpop.f32.mrf.mxu0  ;;  %3205 = vmatpush3.bf16.msra.mxu0 %v3590_v7 }
 0x8bc   : > { %3206 = vmatprep.subr.bf16.mxu0 %v3591_v8  ;;  %v3596_v13 = vld [vmem:[%s4453_s21 + $0x18] sm:$0xff]  }
 0x8bd   : > { %2288 = vmatpush1.bf16.msra.mxu1 %v3565_v42  ;;  %v3643_v8 = vld [vmem:[#allocation24 + $0x38] sm:$0xff] (%p2552_p8)  }
 0x8be   : > { %2289 = vmatprep.subr.bf16.mxu1 %v3570_v43 }
 0x8bf   : > { %3207 = vmatpush3.bf16.msra.mxu0 %v3592_v9  ;;  %v4078_v9 = vmov (%p2552_p8), 0.0  }
 0x8c0   : > { %3208 = vmatprep.subr.bf16.mxu0 %v3593_v10  ;;  %v3644_v10 = vld [vmem:[#allocation24 + $0x30] sm:$0xff] (%p2552_p8)  }
 0x8c1   : > { %2290 = vmatpush1.bf16.msra.mxu1 %v3568_v44 }
 0x8c2   : > { %2291 = vmatprep.subr.bf16.mxu1 %v3573_v45 }
 0x8c3   : > { %3209 = vmatpush3.bf16.msra.mxu0 %v3594_v11  ;;  %v3645_v11 = vld [vmem:[#allocation24 + $0x28] sm:$0xff] (%p2552_p8)  }
 0x8c4   : > { %3210 = vmatprep.subr.bf16.mxu0 %v3595_v12  ;;  %v3647_v12 = vld [vmem:[#allocation24 + $0x18] sm:$0xff] (%p2552_p8)  }
 0x8c5   : > { %v2118_v14 = vpop.f32.mrf.mxu0  ;;  %2292 = vmatpush1.bf16.msra.mxu1 %v3571_v32 }
 0x8c6   : > { %2293 = vmatprep.subr.bf16.mxu1 %v3576_v46 }
 0x8c7   : > { %v3351_v15 = vpop.f32.mrf.mxu0  ;;  %3211 = vmatpush3.bf16.msra.mxu0 %v3596_v13  ;;  %v3649_v13 = vld [vmem:[#allocation24 + $0x8] sm:$0xff] (%p2552_p8)  }
 0x8c8   : > { %v3598_v15 = vld [vmem:[%s4453_s21 + $0x10] sm:$0xff]  }
 0x8c9   : > { %v2121_v16 = vpop.f32.mrf.mxu0  ;;  %2294 = vmatpush1.bf16.msra.mxu1 %v3574_v49 }
 0x8ca   : > { %2295 = vmatprep.subr.bf16.mxu1 %v3579_v50 }
 0x8cb   : > { %v3352_v17 = vpop.f32.mrf.mxu0 }
 0x8cc   : > { %v3600_v17 = vld [vmem:[%s4453_s21 + $0x8] sm:$0xff]  }
 0x8cd   : > { %2296 = vmatpush1.bf16.msra.mxu1 %v3577_v39 }
 0x8ce   : > { %2297 = vmatprep.subr.bf16.mxu1 %v3582_v31 }
 0x8d1   : > { %2298 = vmatpush1.bf16.msra.mxu1 %v3580_v51 }
 0x8d2   : > { %2299 = vmatprep.subr.bf16.mxu1 %v3585_v20 }
 0x8d5   : > { %2300 = vmatpush1.bf16.msra.mxu1 %v3583_v52 }
 0x978   : > { %v2050_v57 = vpop.f32.mrf.mxu1 }
 0x979   : > { %v2119_v18 = vadd.f32 %v2118_v14, %v2050_v57  ;;  %v3597_v14 = vld [vmem:[%s4453_s21 + $0x50] sm:$0xff]   ;;  %v3601_v57 = vld [vmem:[%s4453_s21 + $0x40] sm:$0xff]  }
 0x97a   : > { %v3339_v19 = vpop.f32.mrf.mxu1  ;;  %3212 = vmatprep.subr.bf16.mxu0 %v3597_v14  ;;  %v3650_v14 = vld [vmem:[#allocation24] sm:$0xff] (%p2552_p8)  }
 0x97b   : > { %v4705_v21 = vadd.f32 %v2119_v18, %v4487_v23  ;;  %3213 = vmatpush3.bf16.msra.mxu0 %v3598_v15  ;;  %v3602_v18 = vld [vmem:[%s4453_s21] sm:$0xff]  }
 0x97c   : > { %v2053_v22 = vpop.f32.mrf.mxu1 }
 0x97d   : > { %v2122_v24 = vadd.f32 %v2121_v16, %v2053_v22  ;;  %2131 = vadd.xlane.f32.xlu0 %v4705_v21  ;;  %v3599_v16 = vld [vmem:[%s4453_s21 + $0x48] sm:$0xff]  }
 0x97e   : > { %v3340_v27 = vpop.f32.mrf.mxu1  ;;  %3214 = vmatprep.subr.bf16.mxu0 %v3599_v16 }
 0x97f   : > { %v4709_v4 = vadd.f32 %v2122_v24, %v4489_v25  ;;  %3215 = vmatpush3.bf16.msra.mxu0 %v3600_v17 }
 0x980   : > { %3216 = vmatprep.subr.bf16.mxu0 %v3601_v57  ;;  %v3124_v57 = vld [vmem:[%s4895_s20] ss:$0 sm:$0xff] (%p2552_p8) }
 0x981   : > { %2133 = vadd.xlane.f32.xlu1 %v4709_v4 }
 0x983   : > { %3217 = vmatpush3.bf16.msra.mxu0 %v3602_v18 }
 0x984   : > { %3353 = vmatprep.subr.bf16.mxu0 (%p2552_p8), %v4078_v9 }
 0xa06   : > { %v2132_v28 = vpop.xlane.xlu0 %2131 }
 0xa07   : > { %v2135_v29 = vmul.f32 0.0078125, %v2132_v28 }
 0xa09   : > { %v2137_v30 = vsub.f32 %v4705_v21, %v2135_v29 }
 0xa0a   : > { %v2134_v23 = vpop.xlane.xlu1 %2133 }
 0xa0b   : > { %v2136_v34 = vmul.f32 0.0078125, %v2134_v23  ;;  %v2139_v35 = vmul.f32 %v2137_v30, %v2137_v30 }
 0xa0d   : > { %v2138_v36 = vsub.f32 %v4709_v4, %v2136_v34  ;;  %2141 = vadd.xlane.f32.xlu0 %v2139_v35 }
 0xa0f   : > { %v2140_v25 = vmul.f32 %v2138_v36, %v2138_v36 }
 0xa11   : > { %2143 = vadd.xlane.f32.xlu0 %v2140_v25 }
 0xa96   : > { %v2142_v53 = vpop.xlane.xlu0 %2141 }
 0xa97   : > { %v2145_v54 = vmul.f32 0.0078125, %v2142_v53 }
 0xa99   : > { %v2147_v55 = vadd.f32 1e-05, %v2145_v54 }
 0xa9a   : > { %v2144_v56 = vpop.xlane.xlu0 %2143 }
 0xa9b   : > { %3631 = vrsqrt.f32 %v2147_v55  ;;  %v2146_v58 = vmul.f32 0.0078125, %v2144_v56 }
 0xa9d   : > { %v2148_v59 = vadd.f32 1e-05, %v2146_v58 }
 0xa9f   : > { %3633 = vrsqrt.f32 %v2148_v59 }
 0xaa8   : > { %v3632_v60 = vpop.eup %3631 }
 0xaa9   : > { %v2151_v40 = vmul.f32 %v3632_v60, %v2137_v30 }
 0xaab   : > { %v2159_v33 = vmul.f32 %v3086_v61, %v2151_v40 }
 0xaac   : > { %v3634_v26 = vpop.eup %3633 }
 0xaad   : > { %v2152_v62 = vmul.f32 %v3634_v26, %v2138_v36  ;;  %v2167_v48 = vadd.f32 %v3087_v63, %v2159_v33 }
 0xaaf   : > { %v2160_v0 = vmul.f32 %v3086_v61, %v2152_v62 }
 0xab1   : > { %v2168_v1 = vadd.f32 %v3087_v63, %v2160_v0 }
 0xab3   : > { %v3151_v2 = vpack.c.bf16 %v2168_v1, %v2167_v48 }
 0xab5   : > { %3152 = vst [vmem:[#allocation5] sm:$0xff] %v3151_v2  }
 0xabc   : > { %v3586_v3 = vld [vmem:[#allocation5] sm:$0xff]  }
 0xabd   : > { %2318 = vmatmul.mubr.bf16.vlgmr.msra.gmra.mxu1 %v3586_v3 }
 0xb7d   : > { %v2319_v19 = vpop.f32.mrf.mxu1 }
 0xb7e   : > { %v2334_v22 = vmul.f32 0.044715, %v2319_v19  ;;  %v2330_v40 = vmul.f32 0.5, %v2319_v19 }
 0xb7f   : > { %v2321_v24 = vpop.f32.mrf.mxu1 }
 0xb80   : > { %v2338_v27 = vmul.f32 %v2334_v22, %v2319_v19  ;;  %v2335_v28 = vmul.f32 0.044715, %v2321_v24  ;;  %v2331_v59 = vmul.f32 0.5, %v2321_v24 }
 0xb81   : > { %v2323_v29 = vpop.f32.mrf.mxu1 }
 0xb82   : > { %v2342_v30 = vmul.f32 %v2338_v27, %v2319_v19  ;;  %v2339_v23 = vmul.f32 %v2335_v28, %v2321_v24  ;;  %v2336_v34 = vmul.f32 0.044715, %v2323_v29  ;;  %v2332_v55 = vmul.f32 0.5, %v2323_v29 }
 0xb83   : > { %v2325_v35 = vpop.f32.mrf.mxu1 }
 0xb84   : > { %v2346_v36 = vadd.f32 %v2342_v30, %v2319_v19  ;;  %v2343_v25 = vmul.f32 %v2339_v23, %v2321_v24  ;;  %v2340_v37 = vmul.f32 %v2336_v34, %v2323_v29  ;;  %v2337_v38 = vmul.f32 0.044715, %v2325_v35 }
 0xb85   : > { %v2333_v58 = vmul.f32 0.5, %v2325_v35 }
 0xb86   : > { %v2350_v41 = vmul.f32 0.7978846, %v2346_v36  ;;  %v2347_v42 = vadd.f32 %v2343_v25, %v2321_v24  ;;  %v2344_v43 = vmul.f32 %v2340_v37, %v2323_v29  ;;  %v2341_v44 = vmul.f32 %v2337_v38, %v2325_v35 }
 0xb88   : > { %v2351_v45 = vmul.f32 0.7978846, %v2347_v42  ;;  %v2348_v32 = vadd.f32 %v2344_v43, %v2323_v29  ;;  %v2345_v46 = vmul.f32 %v2341_v44, %v2325_v35  ;;  %3635 = vtanh.f32 %v2350_v41 }
 0xb8a   : > { %v2352_v49 = vmul.f32 0.7978846, %v2348_v32  ;;  %3637 = vtanh.f32 %v2351_v45  ;;  %v2349_v50 = vadd.f32 %v2345_v46, %v2325_v35  ;;  %v3133_v46 = vld [vmem:[%s4896_s18] ss:$0 sm:$0xff] (%p2552_p8) }
 0xb8c   : > { %3639 = vtanh.f32 %v2352_v49  ;;  %v2353_v39 = vmul.f32 0.7978846, %v2349_v50  ;;  %v3134_v50 = vld [vmem:[%s4897_s10] ss:$0 sm:$0xff] (%p2552_p8) }
 0xb8e   : > { %3641 = vtanh.f32 %v2353_v39 }
 0xb95   : > { %v3636_v51 = vpop.eup %3635 }
 0xb96   : > { %v2358_v56 = vadd.f32 1.0, %v3636_v51 }
 0xb97   : > { %v3638_v31 = vpop.eup %3637 }
 0xb98   : > { %v2359_v53 = vadd.f32 1.0, %v3638_v31  ;;  %v2362_v62 = vmul.f32 %v2358_v56, %v2330_v40 }
 0xb99   : > { %v3640_v20 = vpop.eup %3639 }
 0xb9a   : > { %v2360_v52 = vadd.f32 1.0, %v3640_v20  ;;  %v2363_v26 = vmul.f32 %v2359_v53, %v2331_v59 }
 0xb9b   : > { %v3642_v54 = vpop.eup %3641 }
 0xb9c   : > { %v2361_v60 = vadd.f32 1.0, %v3642_v54  ;;  %v2364_v61 = vmul.f32 %v2360_v52, %v2332_v55 }
 0xb9e   : > { %v2365_v33 = vmul.f32 %v2361_v60, %v2333_v58  ;;  %v2366_v0 = vpack.c.bf16 %v2364_v61, %v2362_v62 }
 0xba0   : > { %v2367_v63 = vpack.c.bf16 %v2365_v33, %v2363_v26 }
 0xba2   : > { %2528 = vmatprep.mubr.bf16.mxu0 %v2367_v63 }
 0xba3   : > { %2529 = vmatmul.mubr.bf16.vlgmr.msra.gmra.mxu0 %v2366_v0 }
 0xba4   : > { %3354 = vmatpush3.bf16.msra.mxu0 (%p2552_p8), %v3643_v8  ;;  %3369 = vmatprep.mubr.msk.bf16.mxu0 (%p2552_p8), %vm4079_vm5, %v4078_v9 }
 0xba5   : > { %3355 = vmatprep.subr.bf16.mxu0 (%p2552_p8), %v4078_v9 }
 0xba8   : > { %3356 = vmatpush3.bf16.msra.mxu0 (%p2552_p8), %v3644_v10 }
 0xba9   : > { %3357 = vmatprep.subr.bf16.mxu0 (%p2552_p8), %v4078_v9 }
 0xbac   : > { %3358 = vmatpush3.bf16.msra.mxu0 (%p2552_p8), %v3645_v11 }
 0xbad   : > { %3359 = vmatprep.subr.bf16.mxu0 (%p2552_p8), %v4078_v9 }
 0xc63   : > { %v3218_v48 = vpop.f32.mrf.mxu0 }
 0xc65   : > { %v3219_v1 = vpop.f32.mrf.mxu0 }
 0xc66   : > { %v3220_v2 = vadd.f32 %v3219_v1, %v3218_v48 }
 0xc67   : > { %v3221_v3 = vpop.f32.mrf.mxu0 }
 0xc68   : > { %v2548_v5 = vadd.f32 %v3220_v2, %v4705_v21  ;;  %v3646_v21 = vld [vmem:[#allocation24 + $0x20] sm:$0xff] (%p2552_p8)  }
 0xc69   : > { %v3222_v47 = vpop.f32.mrf.mxu0  ;;  %3360 = vmatpush3.bf16.msra.mxu0 (%p2552_p8), %v3646_v21 }
 0xc6a   : > { %2550 = vst [vmem:[#allocation3] sm:$0xff] %v2548_v5  ;;  %v3223_v6 = vadd.f32 %v3222_v47, %v3221_v3  ;;  %2556 = sbr.rel (!%p2552_p8) target bundleno = 3702 (0xe76), region = 156  ;;  %3361 = vmatprep.subr.bf16.mxu0 (%p2552_p8), %v4078_v9 }
 0xc6c   : > { %v2549_v7 = vadd.f32 %v3223_v6, %v4709_v4  ;;  %v3648_v4 = vld [vmem:[#allocation24 + $0x10] sm:$0xff] (%p2552_p8)  }
 0xc6d   : > { %3362 = vmatpush3.bf16.msra.mxu0 (%p2552_p8), %v3647_v12 }
 0xc6e   : > { %2551 = vst [vmem:[#allocation3 + $0x8] sm:$0xff] %v2549_v7  ;;  %3363 = vmatprep.subr.bf16.mxu0 (%p2552_p8), %v4078_v9 }
 0xc71   : > { %3364 = vmatpush3.bf16.msra.mxu0 %v3648_v4  ;;  %v2557_v15 = vld [vmem:[#allocation3] sm:$0xff] }
 0xc72   : > { %3365 = vmatprep.subr.bf16.mxu0 %v4078_v9 }
 0xc75   : > { %3366 = vmatpush3.bf16.msra.mxu0 %v3649_v13  ;;  %v2558_v16 = vld [vmem:[#allocation3 + $0x8] sm:$0xff] }
 0xc76   : > { %3367 = vmatprep.subr.bf16.mxu0 %v4078_v9  ;;  %v2559_v17 = vpack.c.bf16 %v2558_v16, %v2557_v15 }
 0xc79   : > { %3368 = vmatpush3.bf16.msra.mxu0 %v3650_v14 }
 0xc7c   : > { %3370 = vmatmul.mubr.bf16.vlgmr.msra.gmra.mxu0 %v2559_v17 }
 0xd3c   : > { %v2665_v18 = vpop.f32.mrf.mxu0 }
 0xd3d   : > { %v2666_v19 = vadd.f32 %v3124_v57, %v2665_v18 }
 0xd3e   : > { %v3371_v22 = vpop.f32.mrf.mxu0 }
 0xd3f   : > { %2674 = vadd.xlane.f32.xlu0 %v2666_v19 }
 0xd40   : > { %v2668_v24 = vpop.f32.mrf.mxu0 }
 0xd41   : > { %v2669_v27 = vadd.f32 %v3124_v57, %v2668_v24 }
 0xd42   : > { %v3372_v28 = vpop.f32.mrf.mxu0 }
 0xd43   : > { %2676 = vadd.xlane.f32.xlu0 %v2669_v27 }
 0xdc8   : > { %v2675_v29 = vpop.xlane.xlu0 %2674 }
 0xdc9   : > { %v2679_v30 = vmul.f32 0.0078125, %v2675_v29 }
 0xdcb   : > { %v2681_v23 = vsub.f32 %v2666_v19, %v2679_v30 }
 0xdcc   : > { %v2677_v34 = vpop.xlane.xlu0 %2676 }
 0xdcd   : > { %v2680_v35 = vmul.f32 0.0078125, %v2677_v34  ;;  %v2683_v36 = vmul.f32 %v2681_v23, %v2681_v23 }
 0xdcf   : > { %v2682_v25 = vsub.f32 %v2669_v27, %v2680_v35  ;;  %2685 = vadd.xlane.f32.xlu1 %v2683_v36 }
 0xdd1   : > { %v2684_v37 = vmul.f32 %v2682_v25, %v2682_v25 }
 0xdd3   : > { %2687 = vadd.xlane.f32.xlu1 %v2684_v37 }
 0xe58   : > { %v2686_v38 = vpop.xlane.xlu1 %2685 }
 0xe59   : > { %v2689_v41 = vmul.f32 0.0078125, %v2686_v38 }
 0xe5b   : > { %v2691_v42 = vadd.f32 1e-05, %v2689_v41 }
 0xe5c   : > { %v2688_v43 = vpop.xlane.xlu1 %2687 }
 0xe5d   : > { %3651 = vrsqrt.f32 %v2691_v42  ;;  %v2690_v44 = vmul.f32 0.0078125, %v2688_v43 }
 0xe5f   : > { %v2692_v45 = vadd.f32 1e-05, %v2690_v44 }
 0xe61   : > { %3653 = vrsqrt.f32 %v2692_v45 }
 0xe6a   : > { %v3652_v32 = vpop.eup %3651 }
 0xe6b   : > { %v2695_v49 = vmul.f32 %v3652_v32, %v2681_v23 }
 0xe6d   : > { %v2703_v39 = vmul.f32 %v3133_v46, %v2695_v49 }
 0xe6e   : > { %v3654_v51 = vpop.eup %3653 }
 0xe6f   : > { %v2711_v31 = vadd.f32 %v3134_v50, %v2703_v39  ;;  %v2696_v20 = vmul.f32 %v3654_v51, %v2682_v25 }
 0xe71   : > { %2713 = vst [vmem:[#allocation25] sm:$0xff] %v2711_v31  ;;  %v2704_v52 = vmul.f32 %v3133_v46, %v2696_v20 }
 0xe73   : > { %v2712_v53 = vadd.f32 %v3134_v50, %v2704_v52 }
 0xe75   : > { %2714 = vst [vmem:[#allocation25 + $0x8] sm:$0xff] %v2712_v53 }
 0xe76 PF: > { %s4898_s19 = sld [smem:[#allocation38_spill]]  ;;  %s4080_s28 = smov [#allocation25]  }
 0xe77   : > { %s2724_s26 = sshll.u32 %s4080_s28, 4  ;;  %s2725_s26 = int_to_ptr.vmem [resolvable:$true] %s2724_s26 }
 0xe78   : > { %s3955_s30 = scalar_lea.vmem %s2725_s26, 256  ;;  %p3962_p2 = scmp.lt.s32.totalorder %s2725_s26, %s2725_s26 }
 0xe79   : > { %p3956_p11 = scmp.ne.s32.totalorder %s2725_s26, %s3955_s30  ;;  %p3963_p12 = scmp.lt.s32.totalorder %s3955_s30, %s3955_s30 }
 0xe7b   : > { %p3964_p13 = por %p3963_p12, %p3962_p2 }
 0xe7c   : > { %p3451_p4 = scmp.eq.s32.totalorder %s4898_s19, 1 }
 0xe7e   : > { %p3957_p7 = pnand %p3956_p11, %p3451_p4 }
 0xe80   : > { %p3958_p5 = pneg %p3957_p7 }
 0xe82   : > { %p3965_p3 = pnand %p3964_p13, %p3958_p5 }
 0xe84   : > { %3968 = shalt.err (!%p3965_p3)
}
 0xe85   : > { %s4081_s6 = smov 128   ;;  %s4082_s27 = smov 8  }
 0xe86   : > { %s4899_s22 = sld [smem:[#allocation57_spill]] }
 0xe8c   : > { %3404 = dma.vmem_to_hbm [thread:$0]  (%p3451_p4), %s2725_s26, 256, %s4899_s22, [#allocation9], %s4081_s6, %s4081_s6, %s4082_s27  }
 0xe8d   : > { %4032 = dma.done.wait (%p3451_p4), [#allocation9], 256  }
 0xe8e   : > { %4034 = vsyncadd (%p3451_p4), [#allocation9], 4294967040 }
 0xe8f PF: > { %s4900_s5 = sld [smem:[#allocation37_spill]]  ;;  %s4905_s21 = smov %s4053_s1 }
 0xe90   : > { %s4901_s0 = sld [smem:[#allocation34_spill]] }
 0xe91   : > { %s4902_s30 = sld [smem:[#allocation35_spill]] }
 0xe92   : > { %s4903_s20 = sld [smem:[#allocation41_spill]] }
 0xe93   : > { %s4904_s25 = sld [smem:[#allocation40_spill]] }
 0xe95   : > { %s44_s22 = sadd.s32 1, %s4900_s5  }
 0xe96   : > { %p41_p0 = scmp.ge.s32.totalorder %s44_s22, 4  }
 0xe98   :  { %43 = sbr.rel (!%p41_p0) target bundleno = 30 (0x1e), region = 252 }
 0xe99   : > { %s4906_s1 = smov %s4904_s25 }
 0xe9d   :  { %2740 = vsyncpa [#allocation8], 1 }
 0xe9e   :  { %2742 = vsyncpa [#allocation8 + $0x1], 1 }
 0xe9f   :  { %2743 = vsyncpa [#allocation11], 1 }
 0xea0   :  { %2744 = vsyncpa [#allocation14], 1 }
 0xea1   :  { %2746 = vsyncpa [#allocation14 + $0x1], 1 }
 0xea2   :  { %2747 = vsyncpa [#allocation17], 1 }
 0xea3   :  { %2749 = vsyncpa [#allocation17 + $0x1], 1 }
 0xea4   :  { %2750 = vsyncpa [#allocation20], 1 }
 0xea5   :  { %2752 = vsyncpa [#allocation20 + $0x1], 1 }
 0xea6   :  { %2753 = vsyncpa [#allocation23], 1 }
 0xea7   :  { %2755 = vsyncpa [#allocation23 + $0x1], 1 }
 0xea8   :  { %2756 = vsyncpa [#allocation9], 1 }
 0xea9   :  { %2758 = vsyncpa [#allocation9 + $0x1], 1 }

</bundles_post_ra>
